<compile_context>
chip_gen: v5e
topology: v5e:2x2
jax: 0.10.0
libtpu: 0.0.40
codegen_flags: <defaults>
</compile_context>

<pallas_src>
import functools

import jax
import jax.numpy as jnp
from jax.experimental import pallas as pl
from jax.experimental.pallas import tpu as pltpu


def _round_up(x, m):
    return (x + m - 1) // m * m


def _cdiv(a, b):
    return (a + b - 1) // b


def _vmem_capacity_bytes():
    """Physical VMEM per TensorCore; conservative 64 MiB (v7x) fallback."""
    try:
        info = pltpu.get_tpu_info()
        cap = getattr(info, "vmem_capacity_bytes", None)
        if cap:
            return int(cap)
    except Exception:
        pass
    return 64 * 1024 * 1024


def _pick_tf(d_ffn_p, target):
    """Largest multiple of 128 that divides d_ffn_p and is <= target."""
    target = max(128, min(target, d_ffn_p))
    best = 128
    t = 128
    while t <= target:
        if d_ffn_p % t == 0:
            best = t
        t += 128
    return best


def _est_vmem_bytes(tm, tf, d_model, xsize, wsize):
    return (2 * tm * d_model * xsize                       # x tile (double-buffered)
            + 2 * tm * d_model * xsize                     # out tile (double-buffered)
            + tm * d_model * wsize                         # bf16 x-cast scratch
            + tm * d_model * 4                             # f32 accumulator scratch
            + 2 * (d_model * tf + tf * d_model) * wsize    # w1 / w2 tiles (double-buffered)
            + 2 * (tf + 3 * d_model) * 4                   # b1 / b2 / gamma / beta
            + tm * tf * (4 + wsize))                       # hidden h (f32) + bf16 copy


def ffn_kernel(x_ref, w1_ref, b1_ref, w2_ref, b2_ref, gamma_ref, beta_ref,
               o_ref, xw_ref, acc_ref, *, eps):
    f = pl.program_id(1)

    # --- init phase (first d_ffn step of this row tile) ---
    @pl.when(f == 0)
    def _():
        acc_ref[...] = jnp.zeros_like(acc_ref)
        # Cast x to the MXU dtype ONCE per row tile (hoisted out of the f loop).
        xw_ref[...] = x_ref[...].astype(xw_ref.dtype)

    # --- fused linear1 (+bias, ReLU) and partial linear2 for this d_ffn tile ---
    h = jnp.dot(xw_ref[...], w1_ref[...], preferred_element_type=jnp.float32)
    h = jnp.maximum(h + b1_ref[...].astype(jnp.float32), 0.0)
    # dropout2 has p=0.0 -> identity
    acc_ref[...] += jnp.dot(h.astype(w2_ref.dtype), w2_ref[...],
                            preferred_element_type=jnp.float32)

    # --- finalize: bias2, residual add, LayerNorm (all in f32) ---
    @pl.when(f == pl.num_programs(1) - 1)
    def _():
        x32 = x_ref[...].astype(jnp.float32)               # un-rounded residual
        s = x32 + acc_ref[...] + b2_ref[...].astype(jnp.float32)  # dropout3 p=0 -> identity
        mean = jnp.mean(s, axis=-1, keepdims=True)
        c = s - mean
        var = jnp.mean(c * c, axis=-1, keepdims=True)
        inv = jax.lax.rsqrt(var + eps)
        out = c * inv * gamma_ref[...].astype(jnp.float32) \
              + beta_ref[...].astype(jnp.float32)
        o_ref[...] = out.astype(o_ref.dtype)


def ffn_pallas(x, w1, b1, w2, b2, gamma, beta, *, eps=1e-5, tm=None, tf=512):
    """x: (batch, seq, d_model) -> (batch, seq, d_model).

    w1: (d_model, d_ffn), w2: (d_ffn, d_model)  (i.e. x @ W + b layout).
    """
    batch, seq, d_model = x.shape
    d_ffn = w1.shape[1]
    n = batch * seq

    assert d_model % 128 == 0, "d_model must be a multiple of 128 (lane width)"

    xsize = jnp.dtype(x.dtype).itemsize
    wsize = jnp.dtype(w1.dtype).itemsize

    # Zero-pad d_ffn to a multiple of 128 (padded ReLU units contribute exactly 0).
    d_ffn_p = _round_up(d_ffn, 128)
    if d_ffn_p != d_ffn:
        w1 = jnp.pad(w1, ((0, 0), (0, d_ffn_p - d_ffn)))
        b1 = jnp.pad(b1, ((0, d_ffn_p - d_ffn),))
        w2 = jnp.pad(w2, ((0, d_ffn_p - d_ffn), (0, 0)))

    # Packed-sublane multiple for the x/out dtype (8 for f32, 16 for bf16, 32 for 8-bit).
    sub = 8 * (4 // xsize) if xsize in (1, 2, 4) else 8

    # VMEM budgets (generation-aware via physical capacity).
    physical = _vmem_capacity_bytes()
    cap_budget = max(min(physical - 16 * 1024 * 1024, 96 * 1024 * 1024),
                     24 * 1024 * 1024)
    weight_budget = 40 * 1024 * 1024 if physical >= 100 * 1024 * 1024 else 18 * 1024 * 1024

    # Row tile: big on 128 MiB chips (v5e/v6e), moderate on 64 MiB chips (v7x).
    if tm is None:
        tm = 1024 if physical >= 100 * 1024 * 1024 else 512
    tm = max(sub, min(tm, _round_up(n, sub)))
    tm = _round_up(tm, sub)

    # d_ffn tile: resident-weights fast path (single f step) when W1+W2 fit comfortably;
    # otherwise stream tf-wide tiles (tf always a multiple of 128 dividing d_ffn_p).
    weight_bytes = 2 * d_model * d_ffn_p * wsize
    if weight_bytes <= weight_budget:
        tf_sel = d_ffn_p
    else:
        tf_sel = _pick_tf(d_ffn_p, tf)

    # Shrink tiles (tf first, then tm) until the real footprint fits the cap with headroom.
    while _est_vmem_bytes(tm, tf_sel, d_model, xsize, wsize) > 0.9 * cap_budget:
        if tf_sel > 128:
            new_tf = _pick_tf(d_ffn_p, tf_sel - 128)
            if new_tf < tf_sel:
                tf_sel = new_tf
                continue
        if tm > sub:
            tm = max(sub, (tm // 2 // sub) * sub)
            continue
        break

    # Guarantee >= 2 row tiles when possible so v7x's second TensorCore gets work.
    if n > sub and _cdiv(n, tm) == 1:
        tm = max(sub, min(tm, _round_up(_cdiv(n, 2), sub)))

    n_pad = _round_up(n, tm)
    x2d = x.reshape(n, d_model)
    if n_pad != n:
        x2d = jnp.pad(x2d, ((0, n_pad - n), (0, 0)))

    b1_2d = b1.reshape(1, d_ffn_p)
    b2_2d = b2.reshape(1, d_model)
    gamma_2d = gamma.reshape(1, d_model)
    beta_2d = beta.reshape(1, d_model)

    num_f = d_ffn_p // tf_sel
    grid = (n_pad // tm, num_f)     # rows "parallel" (megacore), d_ffn reduction last

    est = _est_vmem_bytes(tm, tf_sel, d_model, xsize, wsize)
    vmem_limit = int(min(cap_budget, max(int(1.25 * est), 32 * 1024 * 1024)))

    # CostEstimate: weights are re-read once per row tile when streaming (num_f > 1),
    # once total when fully resident (constant block index across the whole grid).
    num_row_tiles = n_pad // tm
    weight_sweeps = num_row_tiles if num_f > 1 else 1
    flops = 4 * n_pad * d_model * d_ffn_p
    bytes_accessed = (2 * n_pad * d_model * xsize                   # x read + out write
                      + weight_sweeps * 2 * d_model * d_ffn_p * wsize
                      + (d_ffn_p + 3 * d_model) * 4)

    kernel = functools.partial(ffn_kernel, eps=eps)

    out2d = pl.pallas_call(
        kernel,
        out_shape=jax.ShapeDtypeStruct((n_pad, d_model), x.dtype),
        grid_spec=pltpu.PrefetchScalarGridSpec(
            num_scalar_prefetch=0,
            grid=grid,
            in_specs=[
                pl.BlockSpec((tm, d_model), lambda i, f: (i, 0)),     # x tile (resident over f)
                pl.BlockSpec((d_model, tf_sel), lambda i, f: (0, f)), # w1 tile
                pl.BlockSpec((1, tf_sel), lambda i, f: (0, f)),       # b1 tile
                pl.BlockSpec((tf_sel, d_model), lambda i, f: (f, 0)), # w2 tile
                pl.BlockSpec((1, d_model), lambda i, f: (0, 0)),      # b2
                pl.BlockSpec((1, d_model), lambda i, f: (0, 0)),      # ln gamma
                pl.BlockSpec((1, d_model), lambda i, f: (0, 0)),      # ln beta
            ],
            out_specs=pl.BlockSpec((tm, d_model), lambda i, f: (i, 0)),
            scratch_shapes=[
                pltpu.VMEM((tm, d_model), w1.dtype),      # hoisted bf16 cast of x
                pltpu.VMEM((tm, d_model), jnp.float32),   # f32 accumulator
            ],
        ),
        compiler_params=pltpu.CompilerParams(
            dimension_semantics=("parallel", "arbitrary"),
            vmem_limit_bytes=vmem_limit),
        cost_estimate=pl.CostEstimate(
            flops=flops, transcendentals=n_pad, bytes_accessed=bytes_accessed),
    )(x2d, w1, b1_2d, w2, b2_2d, gamma_2d, beta_2d)

    if n_pad != n:
        out2d = out2d[:n]
    return out2d.reshape(batch, seq, d_model)


def ffn_reference(x, w1, b1, w2, b2, gamma, beta, eps=1e-5):
    """Pure-JAX reference mirroring the kernel's mixed precision:
    matmul inputs rounded to the weights' dtype, f32 accumulation / norm."""
    f32 = jnp.float32
    x32 = x.astype(f32)
    h = x.astype(w1.dtype).astype(f32) @ w1.astype(f32) + b1.astype(f32)
    h = jnp.maximum(h, 0.0)
    y = h.astype(w2.dtype).astype(f32) @ w2.astype(f32) + b2.astype(f32)
    s = x32 + y
    mean = jnp.mean(s, axis=-1, keepdims=True)
    var = jnp.mean((s - mean) ** 2, axis=-1, keepdims=True)
    return (s - mean) * jax.lax.rsqrt(var + eps) * gamma.astype(f32) + beta.astype(f32)


if __name__ == "__main__":
    d_model, d_ffn = 256, 1024
    batch, seq = 2, 8

    key = jax.random.PRNGKey(0)
    kx, kw1, kb1, kw2, kb2, kg, kbt = jax.random.split(key, 7)

    x = jax.random.normal(kx, (batch, seq, d_model), dtype=jnp.float32)

    # Deterministic synthetic parameters (PyTorch-like uniform init scales).
    lim1 = 1.0 / (d_model ** 0.5)
    lim2 = 1.0 / (d_ffn ** 0.5)
    # bf16 weights (MXU-native); biases / LayerNorm params stay f32.
    w1 = jax.random.uniform(kw1, (d_model, d_ffn), minval=-lim1, maxval=lim1,
                            dtype=jnp.float32).astype(jnp.bfloat16)
    b1 = jax.random.uniform(kb1, (d_ffn,), minval=-lim1, maxval=lim1,
                            dtype=jnp.float32)
    w2 = jax.random.uniform(kw2, (d_ffn, d_model), minval=-lim2, maxval=lim2,
                            dtype=jnp.float32).astype(jnp.bfloat16)
    b2 = jax.random.uniform(kb2, (d_model,), minval=-lim2, maxval=lim2,
                            dtype=jnp.float32)
    gamma = 1.0 + 0.1 * jax.random.normal(kg, (d_model,), dtype=jnp.float32)
    beta = 0.1 * jax.random.normal(kbt, (d_model,), dtype=jnp.float32)

    out = ffn_pallas(x, w1, b1, w2, b2, gamma, beta)
    out = jax.block_until_ready(out)

    ref = ffn_reference(x, w1, b1, w2, b2, gamma, beta)
    assert out.shape == (batch, seq, d_model)
    assert jnp.allclose(out, ref, atol=2e-3, rtol=2e-3), "mismatch vs reference"

    print("KERNEL_OK")
</pallas_src>

<mosaic_0001>
module attributes {stable_mosaic.version = 11 : i64} {
  func.func @ffn_kernel(%arg0: i32, %arg1: i32, %arg2: memref<8x256xf32, #tpu.memory_space<vmem>>, %arg3: memref<256x1024xbf16, #tpu.memory_space<vmem>>, %arg4: memref<1x1024xf32, #tpu.memory_space<vmem>>, %arg5: memref<1024x256xbf16, #tpu.memory_space<vmem>>, %arg6: memref<1x256xf32, #tpu.memory_space<vmem>>, %arg7: memref<1x256xf32, #tpu.memory_space<vmem>>, %arg8: memref<1x256xf32, #tpu.memory_space<vmem>>, %arg9: memref<8x256xf32, #tpu.memory_space<vmem>>, %arg10: memref<8x256xbf16, #tpu.memory_space<vmem>>, %arg11: memref<8x256xf32, #tpu.memory_space<vmem>>) attributes {dimension_semantics = [#tpu.dimension_semantics<parallel>, #tpu.dimension_semantics<arbitrary>], iteration_bounds = array<i64: 2, 1>, scalar_prefetch = 0 : i64, scratch_operands = 2 : i64, tpu.core_type = #tpu.core_type<tc>, window_params = [{transform_indices = @transform_0, window_bounds = array<i64: 8, 256>}, {transform_indices = @transform_1, window_bounds = array<i64: 256, 1024>}, {transform_indices = @transform_2, window_bounds = array<i64: 1, 1024>}, {transform_indices = @transform_3, window_bounds = array<i64: 1024, 256>}, {pipeline_mode = #tpu.pipeline_mode<synchronous>, transform_indices = @transform_4, window_bounds = array<i64: 1, 256>}, {pipeline_mode = #tpu.pipeline_mode<synchronous>, transform_indices = @transform_5, window_bounds = array<i64: 1, 256>}, {pipeline_mode = #tpu.pipeline_mode<synchronous>, transform_indices = @transform_6, window_bounds = array<i64: 1, 256>}, {transform_indices = @transform_7, window_bounds = array<i64: 8, 256>}]} {
    %c0_i32 = arith.constant 0 : i32
    %0 = arith.cmpi eq, %arg1, %c0_i32 : i32
    %1 = arith.extui %0 : i1 to i32
    %c0_i32_0 = arith.constant 0 : i32
    %2 = arith.cmpi ne, %1, %c0_i32_0 : i32
    scf.if %2 {
      %cst_16 = arith.constant 0.000000e+00 : f32
      %20 = vector.broadcast %cst_16 : f32 to vector<8x256xf32>
      %c0_17 = arith.constant 0 : index
      %c0_18 = arith.constant 0 : index
      %21 = vector.load %arg11[%c0_17, %c0_18] : memref<8x256xf32, #tpu.memory_space<vmem>>, vector<8x256xf32>
      tpu.vector_store %arg11[%c0_17, %c0_18], %20 {strides = array<i32>} : memref<8x256xf32, #tpu.memory_space<vmem>>, vector<8x256xf32>,
      %c0_19 = arith.constant 0 : index
      %c0_20 = arith.constant 0 : index
      %22 = vector.load %arg2[%c0_19, %c0_20] : memref<8x256xf32, #tpu.memory_space<vmem>>, vector<8x256xf32>
      %23 = arith.truncf %22 : vector<8x256xf32> to vector<8x256xbf16>
      %c0_21 = arith.constant 0 : index
      %c0_22 = arith.constant 0 : index
      %24 = vector.load %arg10[%c0_21, %c0_22] : memref<8x256xbf16, #tpu.memory_space<vmem>>, vector<8x256xbf16>
      tpu.vector_store %arg10[%c0_21, %c0_22], %23 {strides = array<i32>} : memref<8x256xbf16, #tpu.memory_space<vmem>>, vector<8x256xbf16>,
    } else {
    }
    %c0 = arith.constant 0 : index
    %c0_1 = arith.constant 0 : index
    %3 = vector.load %arg10[%c0, %c0_1] : memref<8x256xbf16, #tpu.memory_space<vmem>>, vector<8x256xbf16>
    %c0_2 = arith.constant 0 : index
    %c0_3 = arith.constant 0 : index
    %4 = vector.load %arg3[%c0_2, %c0_3] : memref<256x1024xbf16, #tpu.memory_space<vmem>>, vector<256x1024xbf16>
    %cst = arith.constant dense<0.000000e+00> : vector<8x1024xf32>
    %5 = tpu.matmul %3, %4, %cst {dimension_numbers = #tpu.dot_dimension_numbers<[1], [0], [0], [1], [0, 0, 1, 1], [], []>} : vector<8x256xbf16>, vector<256x1024xbf16>, vector<8x1024xf32> -> vector<8x1024xf32>
    %c0_4 = arith.constant 0 : index
    %c0_5 = arith.constant 0 : index
    %6 = vector.load %arg4[%c0_4, %c0_5] : memref<1x1024xf32, #tpu.memory_space<vmem>>, vector<1x1024xf32>
    %7 = vector.broadcast %6 : vector<1x1024xf32> to vector<8x1024xf32>
    %8 = arith.addf %5, %7 : vector<8x1024xf32>
    %cst_6 = arith.constant 0.000000e+00 : f32
    %9 = vector.broadcast %cst_6 : f32 to vector<8x1024xf32>
    %10 = arith.maximumf %8, %9 : vector<8x1024xf32>
    %c0_7 = arith.constant 0 : index
    %c0_8 = arith.constant 0 : index
    %11 = vector.load %arg11[%c0_7, %c0_8] : memref<8x256xf32, #tpu.memory_space<vmem>>, vector<8x256xf32>
    %12 = arith.truncf %10 : vector<8x1024xf32> to vector<8x1024xbf16>
    %c0_9 = arith.constant 0 : index
    %c0_10 = arith.constant 0 : index
    %13 = vector.load %arg5[%c0_9, %c0_10] : memref<1024x256xbf16, #tpu.memory_space<vmem>>, vector<1024x256xbf16>
    %cst_11 = arith.constant dense<0.000000e+00> : vector<8x256xf32>
    %14 = tpu.matmul %12, %13, %cst_11 {dimension_numbers = #tpu.dot_dimension_numbers<[1], [0], [0], [1], [0, 0, 1, 1], [], []>} : vector<8x1024xbf16>, vector<1024x256xbf16>, vector<8x256xf32> -> vector<8x256xf32>
    %15 = arith.addf %11, %14 : vector<8x256xf32>
    %c0_12 = arith.constant 0 : index
    %c0_13 = arith.constant 0 : index
    %16 = vector.load %arg11[%c0_12, %c0_13] : memref<8x256xf32, #tpu.memory_space<vmem>>, vector<8x256xf32>
    tpu.vector_store %arg11[%c0_12, %c0_13], %15 {strides = array<i32>} : memref<8x256xf32, #tpu.memory_space<vmem>>, vector<8x256xf32>,
    %c0_i32_14 = arith.constant 0 : i32
    %17 = arith.cmpi eq, %arg1, %c0_i32_14 : i32
    %18 = arith.extui %17 : i1 to i32
    %c0_i32_15 = arith.constant 0 : i32
    %19 = arith.cmpi ne, %18, %c0_i32_15 : i32
    scf.if %19 {
      %c0_16 = arith.constant 0 : index
      %c0_17 = arith.constant 0 : index
      %20 = vector.load %arg2[%c0_16, %c0_17] : memref<8x256xf32, #tpu.memory_space<vmem>>, vector<8x256xf32>
      %c0_18 = arith.constant 0 : index
      %c0_19 = arith.constant 0 : index
      %21 = vector.load %arg11[%c0_18, %c0_19] : memref<8x256xf32, #tpu.memory_space<vmem>>, vector<8x256xf32>
      %22 = arith.addf %20, %21 : vector<8x256xf32>
      %c0_20 = arith.constant 0 : index
      %c0_21 = arith.constant 0 : index
      %23 = vector.load %arg6[%c0_20, %c0_21] : memref<1x256xf32, #tpu.memory_space<vmem>>, vector<1x256xf32>
      %24 = vector.broadcast %23 : vector<1x256xf32> to vector<8x256xf32>
      %25 = arith.addf %22, %24 : vector<8x256xf32>
      %cst_22 = arith.constant dense<0.000000e+00> : vector<8xf32>
      %26 = vector.multi_reduction <add>, %25, %cst_22 [1] : vector<8x256xf32> to vector<8xf32>
      %27 = vector.shape_cast %26 : vector<8xf32> to vector<8x1xf32>
      %cst_23 = arith.constant 2.560000e+02 : f32
      %28 = vector.broadcast %cst_23 : f32 to vector<8x1xf32>
      %29 = arith.divf %27, %28 : vector<8x1xf32>
      %30 = vector.broadcast %29 : vector<8x1xf32> to vector<8x256xf32>
      %31 = arith.subf %25, %30 : vector<8x256xf32>
      %32 = arith.mulf %31, %31 : vector<8x256xf32>
      %cst_24 = arith.constant dense<0.000000e+00> : vector<8xf32>
      %33 = vector.multi_reduction <add>, %32, %cst_24 [1] : vector<8x256xf32> to vector<8xf32>
      %34 = vector.shape_cast %33 : vector<8xf32> to vector<8x1xf32>
      %cst_25 = arith.constant 2.560000e+02 : f32
      %35 = vector.broadcast %cst_25 : f32 to vector<8x1xf32>
      %36 = arith.divf %34, %35 : vector<8x1xf32>
      %cst_26 = arith.constant 9.99999974E-6 : f32
      %37 = vector.broadcast %cst_26 : f32 to vector<8x1xf32>
      %38 = arith.addf %36, %37 : vector<8x1xf32>
      %39 = math.rsqrt %38 : vector<8x1xf32>
      %40 = vector.broadcast %39 : vector<8x1xf32> to vector<8x256xf32>
      %41 = arith.mulf %31, %40 : vector<8x256xf32>
      %c0_27 = arith.constant 0 : index
      %c0_28 = arith.constant 0 : index
      %42 = vector.load %arg7[%c0_27, %c0_28] : memref<1x256xf32, #tpu.memory_space<vmem>>, vector<1x256xf32>
      %43 = vector.broadcast %42 : vector<1x256xf32> to vector<8x256xf32>
      %44 = arith.mulf %41, %43 : vector<8x256xf32>
      %c0_29 = arith.constant 0 : index
      %c0_30 = arith.constant 0 : index
      %45 = vector.load %arg8[%c0_29, %c0_30] : memref<1x256xf32, #tpu.memory_space<vmem>>, vector<1x256xf32>
      %46 = vector.broadcast %45 : vector<1x256xf32> to vector<8x256xf32>
      %47 = arith.addf %44, %46 : vector<8x256xf32>
      %c0_31 = arith.constant 0 : index
      %c0_32 = arith.constant 0 : index
      %48 = vector.load %arg9[%c0_31, %c0_32] : memref<8x256xf32, #tpu.memory_space<vmem>>, vector<8x256xf32>
      tpu.vector_store %arg9[%c0_31, %c0_32], %47 {strides = array<i32>} : memref<8x256xf32, #tpu.memory_space<vmem>>, vector<8x256xf32>,
    } else {
    }
    return
  }
  func.func @transform_0(%arg0: i32, %arg1: i32) -> (i32, i32) {
    %c0_i32 = arith.constant 0 : i32
    %c0_i32_0 = arith.constant 0 : i32
    return %arg0, %c0_i32 : i32, i32
  }
  func.func @transform_1(%arg0: i32, %arg1: i32) -> (i32, i32) {
    %c0_i32 = arith.constant 0 : i32
    %c0_i32_0 = arith.constant 0 : i32
    return %c0_i32, %arg1 : i32, i32
  }
  func.func @transform_2(%arg0: i32, %arg1: i32) -> (i32, i32) {
    %c0_i32 = arith.constant 0 : i32
    %c0_i32_0 = arith.constant 0 : i32
    return %c0_i32, %arg1 : i32, i32
  }
  func.func @transform_3(%arg0: i32, %arg1: i32) -> (i32, i32) {
    %c0_i32 = arith.constant 0 : i32
    %c0_i32_0 = arith.constant 0 : i32
    return %arg1, %c0_i32 : i32, i32
  }
  func.func @transform_4(%arg0: i32, %arg1: i32) -> (i32, i32) {
    %c0_i32 = arith.constant 0 : i32
    %c0_i32_0 = arith.constant 0 : i32
    %c0_i32_1 = arith.constant 0 : i32
    return %c0_i32, %c0_i32_0 : i32, i32
  }
  func.func @transform_5(%arg0: i32, %arg1: i32) -> (i32, i32) {
    %c0_i32 = arith.constant 0 : i32
    %c0_i32_0 = arith.constant 0 : i32
    %c0_i32_1 = arith.constant 0 : i32
    return %c0_i32, %c0_i32_0 : i32, i32
  }
  func.func @transform_6(%arg0: i32, %arg1: i32) -> (i32, i32) {
    %c0_i32 = arith.constant 0 : i32
    %c0_i32_0 = arith.constant 0 : i32
    %c0_i32_1 = arith.constant 0 : i32
    return %c0_i32, %c0_i32_0 : i32, i32
  }
  func.func @transform_7(%arg0: i32, %arg1: i32) -> (i32, i32) {
    %c0_i32 = arith.constant 0 : i32
    %c0_i32_0 = arith.constant 0 : i32
    return %arg0, %c0_i32 : i32, i32
  }
}

</mosaic_0001>

<bundles_post_ra>
// kernel: tpu_custom_call.1
= control target key start
LH: loop header
LB: loop body
LE: loop exit
PB: predicated region body
PF: predicated region fallthrough
CT: control target
= control target key end

     0   :  { %s4562_s0 = inlined_call_operand.hbm [shape: f32[16,256], index: 0, kind: input, shape index: {}]   ;;  %s4563_s1 = inlined_call_operand.hbm [shape: bf16[256,1024], index: 1, kind: input, shape index: {}]   ;;  %s4564_s2 = inlined_call_operand.hbm [shape: f32[1,1024], index: 2, kind: input, shape index: {}]   ;;  %s4565_s3 = inlined_call_operand.hbm [shape: bf16[1024,256], index: 3, kind: input, shape index: {}]   ;;  %s4566_s4 = inlined_call_operand.vmem [shape: f32[1,256], index: 4, kind: input, shape index: {}]   ;;  %s4567_s5 = inlined_call_operand.vmem [shape: f32[1,256], index: 5, kind: input, shape index: {}]   ;;  %s4568_s6 = inlined_call_operand.hbm [shape: f32[1,256], index: 6, kind: input, shape index: {}]   ;;  %s4569_s7 = inlined_call_operand.hbm [shape: f32[16,256], index: 7, kind: output, shape index: {}]  }
   0x1   :  { %4570 = sst [smem:[#allocation18_spill]] %s4563_s1 }
   0x2   :  { %12 = vsyncpa [#allocation5], 0 }
   0x3   :  { %14 = vsyncpa [#allocation5 + $0x1], 0 }
   0x4   :  { %15 = vsyncpa [#allocation8], 0 }
   0x5   :  { %16 = vsyncpa [#allocation11], 0 }
   0x6   :  { %17 = vsyncpa [#allocation6], 0 }
   0x7   :  { %19 = vsyncpa [#allocation6 + $0x1], 0  ;;  %s4322_s24 = smov 0   ;;  %s4324_s25 = smov 0  }
   0x8   :  { %s4326_s26 = smov 0   ;;  %s4328_s27 = smov 0  }
   0x9   :  { %s4330_s28 = smov 0   ;;  %s4332_s29 = smov 0  }
   0xa LB: > { %s2614_s30 = sadd.s32 4294967295, %s4271_s29   ;;  %p2616_p0 = scmp.ge.s32.totalorder %s4271_s29, 1  ;;  %s4271_s29 = sphi %s4332_s29, %s25_s29   ;;  %s4267_s28 = sphi %s4330_s28, %s4582_s28   ;;  %s4263_s27 = sphi %s4328_s27, %s4581_s27   ;;  %s4259_s26 = sphi %s4326_s26, %s4580_s26   ;;  %s4255_s25 = sphi %s4324_s25, %s4579_s25   ;;  %s4251_s24 = sphi %s4322_s24, %s4578_s24  }
   0xb   : > { %p4356_p1 = scmp.eq.s32.totalorder %s2614_s30, 0  ;;  %p235_p2 = scmp.lt.s32.totalorder %s4271_s29, 3 }
   0xc   : > { %s4572_s1 = sld [smem:[#allocation18_spill]]  ;;  %s4273_s13 = smov [#allocation7]  }
   0xd   : > { %p4364_p3 = pnand %p2616_p0, %p235_p2  ;;  %s251_s14 = sshll.u32 %s4273_s13, 4  ;;  %s252_s14 = int_to_ptr.vmem [resolvable:$true] %s251_s14 }
   0xe   : > { %p2621_p6 = scmp.ge.s32.totalorder %s4271_s29, 2  ;;  %s281_s18 = sshll.u32 %s4565_s3, 4  ;;  %s282_s18 = int_to_ptr.hbm [resolvable:$true] %s281_s18 }
   0xf   : > { %p3939_p4 = pneg %p4364_p3  ;;  %s4274_s19 = smov 512  }
  0x10   : > { %s4275_s20 = smov 32   ;;  %s4276_s21 = smov [#allocation10]  }
  0x11   : > { %p4372_p5 = pnand %p3939_p4, %p4356_p1  ;;  %s283_s22 = sshll.u32 %s4276_s21, 4  ;;  %s284_s22 = int_to_ptr.vmem [resolvable:$true] %s283_s22 }
  0x12   : > { %s249_s11 = sshll.u32 %s4572_s1, 4  ;;  %s4277_s23 = smov 128   ;;  %s250_s11 = int_to_ptr.hbm [resolvable:$true] %s249_s11 }
  0x13   : > { %3942 = dma.hbm_to_vmem [thread:$0]  (!%p4372_p5), %s250_s11, 16384, %s252_s14, [#allocation8], %s4274_s19, %s4274_s19, %s4275_s20  }
  0x14   : > { %s4278_s9 = smov 8   ;;  %s266_s16 = sshll.u32 %s4564_s2, 4  ;;  %s267_s16 = int_to_ptr.hbm [resolvable:$true] %s266_s16 }
  0x15   : > { %3948 = dma.hbm_to_vmem [thread:$0]  (!%p4372_p5), %s282_s18, 16384, %s284_s22, [#allocation11], %s4277_s23, %s4277_s23, %s4278_s9  }
  0x16   : > { %s4279_s17 = smov [#allocation9]   ;;  %s302_s20 = sshll.u32 %s4568_s6, 4  ;;  %s303_s20 = int_to_ptr.hbm [resolvable:$true] %s302_s20 }
  0x17   : > { %s268_s11 = sshll.u32 %s4279_s17, 4  ;;  %s4280_s18 = smov [#allocation12]   ;;  %s269_s11 = int_to_ptr.vmem [resolvable:$true] %s268_s11 }
  0x18   : > { %3945 = dma.hbm_to_vmem [thread:$0]  (!%p4372_p5), %s267_s16, 128, %s269_s11, [#allocation8]  }
  0x19   : > { %s304_s21 = sshll.u32 %s4280_s18, 4  ;;  %s37_s22 = sadd.s32 1, %s4267_s28  ;;  %s305_s21 = int_to_ptr.vmem [resolvable:$true] %s304_s21 }
  0x1a   : > { %3951 = dma.hbm_to_vmem [thread:$0]  (!%p4372_p5), %s303_s20, 32, %s305_s21, [#allocation11]  }
  0x1b   : > { %s2615_s23 = sadd.s32 4294967294, %s4271_s29   ;;  %p39_p7 = scmp.ge.s32.totalorder %s37_s22, 2 }
  0x1c   : > { %s44_s9 = sadd.s32 1, %s4259_s26  ;;  %p51_p8 = scmp.ne.s32.totalorder %s4259_s26, %s4255_s25 }
  0x1d   : > { %s4584_s22 = smov (%p39_p7, %s37_s22), 0  ;;  %p52_p9 = scmp.eq.s32.totalorder %s4271_s29, 0 }
  0x1e   : > { %p57_p10 = scmp.ne.s32.totalorder %s4255_s25, %s4251_s24  ;;  %s41_s10 = ssub.s32 %s4267_s28, %s4584_s22 }
  0x1f   : > { %p222_p11 = scmp.eq.s32.totalorder %s2614_s30, 1  ;;  %p42_p12 = scmp.eq.s32.totalorder %s41_s10, 0 }
  0x20   : > { %p4410_p13 = por %p4356_p1, %p57_p10  ;;  %p228_p2 = scmp.eq.s32.totalorder %s2615_s23, 1 }
  0x21   : > { %p4414_p0 = por %p222_p11, %p51_p8  ;;  %p53_p4 = por %p52_p9, %p51_p8 }
  0x22   : > { %s4419_s16 = scalar_select %p42_p12, %s4259_s26, %s44_s9  }
  0x23   : > { %p4421_p5 = por %p228_p2, %p57_p10  ;;  %s315_s11 = sand.u32 1, %s4259_s26  }
  0x24   : > { %s3661_s30 = sshll.u32 %s4267_s28, 4  ;;  %p3964_p7 = scmp.lt.s32.totalorder %s4271_s29, 2 }
  0x25   : > { %s2622_s14 = sshll.u32 %s315_s11, 4  ;;  %s324_s18 = scalar_lea.hbm %s4562_s0, %s3661_s30 }
  0x26   : > { %s326_s21 = sshll.u32 %s324_s18, 4  ;;  %s319_s10 = scalar_lea.vmem [#allocation4], %s2622_s14  ;;  %s327_s21 = int_to_ptr.hbm [resolvable:$true] %s326_s21 }
  0x27   : > { %s328_s1 = sshll.u32 %s319_s10, 4  ;;  %p3953_p11 = pnand %p3964_p7, %p53_p4  ;;  %s329_s1 = int_to_ptr.vmem [resolvable:$true] %s328_s1 }
  0x28   : > { %s316_s23 = scalar_lea.sflag [#allocation5], %s315_s11  ;;  %337 = sbr.rel (%p4364_p3) target bundleno = 765 (0x2fd), region = 48 }
  0x29   : > { %3955 = dma.hbm_to_vmem [thread:$0]  (!%p3953_p11), %s327_s21, 256, %s329_s1, %s316_s23  }
  0x2a   : > { %s4434_s9 = sand.u32 (!%p4364_p3), 1, %s4255_s25  }
  0x2b   : > { %s2626_s19 = sshll.u32 (!%p4364_p3), %s4434_s9, 4  ;;  %s340_s30 = scalar_lea.sflag (!%p4364_p3), [#allocation5], %s4434_s9 }
  0x2c   : > { %s4440_s14 = scalar_lea.vmem (!%p4364_p3), [#allocation4], %s2626_s19 }
  0x2d   : > { %4234 = dma.done.wait (%p4410_p13), %s340_s30, 256  }
  0x2e   : > { %4236 = vsyncadd (%p4410_p13), %s340_s30, 4294967040 }
  0x2f   : > { %4238 = dma.done.wait (%p4356_p1), [#allocation8], 16512  }
  0x30   : > { %4240 = vsyncadd (%p4356_p1), [#allocation8], 4294950784 }
  0x31   : > { %4242 = dma.done.wait (%p4356_p1), [#allocation11], 16416  }
  0x32   : > { %4244 = vsyncadd (%p4356_p1), [#allocation11], 4294950880  ;;  %v2858_v0 = vld [vmem:[#allocation7 + $0x1c0] sm:$0xf]  ;;  %v3718_v5 = vld [vmem:[#allocation7 + $0x1c4] sm:$0xf] }
  0x33   : > { %v3722_v1 = vld [vmem:[#allocation7 + $0x1dc] sm:$0xf0]  ;;  %v2860_v6 = vld [vmem:[#allocation7 + $0x1e0] sm:$0xf0]  ;;  %s3918_s11 = sshll.u32 %s4263_s27, 4  ;;  %s394_s27 = scalar_lea.vmem [#allocation13], %s2626_s19 }
  0x34   : > { %v3114_v2 = vld [vmem:[#allocation7 + $0x3c0] sm:$0xf]  ;;  %v2859_v3 = vor.u32 %v3722_v1, %v2858_v0  ;;  %v2863_v8 = vor.u32 %v3718_v5, %v2860_v6  ;;  %v3782_v9 = vld [vmem:[#allocation7 + $0x3c4] sm:$0xf]  ;;  %s2487_s21 = scalar_lea.hbm %s4569_s7, %s3918_s11  ;;  %s2489_s10 = sshll.u32 %s394_s27, 4  ;;  %s2490_s10 = int_to_ptr.vmem [resolvable:$true] %s2489_s10 }
  0x35   : > { %v3786_v4 = vld [vmem:[#allocation7 + $0x3dc] sm:$0xf0]  ;;  %v3116_v10 = vld [vmem:[#allocation7 + $0x3e0] sm:$0xf0]  ;;  %s2491_s23 = sshll.u32 %s2487_s21, 4  ;;  %s2476_s30 = scalar_lea.sflag [#allocation6], %s4434_s9  ;;  %s2492_s23 = int_to_ptr.hbm [resolvable:$true] %s2491_s23 }
  0x36   : > { %v3115_v7 = vor.u32 %v3786_v4, %v3114_v2  ;;  %v2826_v11 = vld [vmem:[#allocation7 + $0x180] sm:$0xf]  ;;  %1202 = vmatpush.bf16.msra.mxu0 %v2859_v3  ;;  %v3119_v12 = vor.u32 %v3782_v9, %v3116_v10  ;;  %1228 = vmatpush.bf16.msra.mxu2 %v2863_v8  ;;  %v3710_v18 = vld [vmem:[#allocation7 + $0x184] sm:$0xf]  ;;  %s4201_s19 = scalar_lea.hbm %s4569_s7, 32 }
  0x37   : > { %v3714_v13 = vld [vmem:[#allocation7 + $0x19c] sm:$0xf0]  ;;  %v2828_v19 = vld [vmem:[#allocation7 + $0x1a0] sm:$0xf0] }
  0x38   : > { %v3082_v14 = vld [vmem:[#allocation7 + $0x380] sm:$0xf]  ;;  %1215 = vmatpush.bf16.msra.mxu1 %v3115_v7  ;;  %v2827_v16 = vor.u32 %v3714_v13, %v2826_v11  ;;  %v3774_v20 = vld [vmem:[#allocation7 + $0x384] sm:$0xf]  ;;  %1241 = vmatpush.bf16.msra.mxu3 %v3119_v12  ;;  %v2831_v21 = vor.u32 %v3710_v18, %v2828_v19 }
  0x39   : > { %v3778_v15 = vld [vmem:[#allocation7 + $0x39c] sm:$0xf0]  ;;  %v3084_v22 = vld [vmem:[#allocation7 + $0x3a0] sm:$0xf0] }
  0x3a   : > { %v3083_v17 = vor.u32 %v3778_v15, %v3082_v14  ;;  %v2794_v23 = vld [vmem:[#allocation7 + $0x140] sm:$0xf]  ;;  %v3087_v25 = vor.u32 %v3774_v20, %v3084_v22  ;;  %v3702_v28 = vld [vmem:[#allocation7 + $0x144] sm:$0xf]  ;;  %1203 = vmatpush.bf16.msra.mxu0 %v2827_v16  ;;  %1229 = vmatpush.bf16.msra.mxu2 %v2831_v21 }
  0x3b   : > { %v3706_v24 = vld [vmem:[#allocation7 + $0x15c] sm:$0xf0]  ;;  %v2796_v30 = vld [vmem:[#allocation7 + $0x160] sm:$0xf0] }
  0x3c   : > { %v3050_v26 = vld [vmem:[#allocation7 + $0x340] sm:$0xf]  ;;  %v2795_v29 = vor.u32 %v3706_v24, %v2794_v23  ;;  %v3766_v31 = vld [vmem:[#allocation7 + $0x344] sm:$0xf]  ;;  %1216 = vmatpush.bf16.msra.mxu1 %v3083_v17  ;;  %v2799_v34 = vor.u32 %v3702_v28, %v2796_v30  ;;  %1242 = vmatpush.bf16.msra.mxu3 %v3087_v25  ;;  %v2866_v28 = vld [vmem:[#allocation7 + $0x1c8] sm:$0xf] }
  0x3d   : > { %v3770_v27 = vld [vmem:[#allocation7 + $0x35c] sm:$0xf0]  ;;  %v3052_v32 = vld [vmem:[#allocation7 + $0x360] sm:$0xf0]  ;;  %v3122_v30 = vld [vmem:[#allocation7 + $0x3c8] sm:$0xf] }
  0x3e   : > { %v3051_v33 = vor.u32 %v3770_v27, %v3050_v26  ;;  %v2762_v35 = vld [vmem:[#allocation7 + $0x100] sm:$0xf]  ;;  %v3055_v38 = vor.u32 %v3766_v31, %v3052_v32  ;;  %v3694_v40 = vld [vmem:[#allocation7 + $0x104] sm:$0xf]  ;;  %1204 = vmatpush.bf16.msra.mxu0 %v2795_v29  ;;  %1230 = vmatpush.bf16.msra.mxu2 %v2799_v34  ;;  %v3723_v29 = vld [vmem:[#allocation7 + $0x1e4] sm:$0xf0] }
  0x3f   : > { %v3698_v36 = vld [vmem:[#allocation7 + $0x11c] sm:$0xf0]  ;;  %v2764_v41 = vld [vmem:[#allocation7 + $0x120] sm:$0xf0]  ;;  %v3787_v32 = vld [vmem:[#allocation7 + $0x3e4] sm:$0xf0] }
  0x40   : > { %v3018_v37 = vld [vmem:[#allocation7 + $0x300] sm:$0xf]  ;;  %v3758_v42 = vld [vmem:[#allocation7 + $0x304] sm:$0xf]  ;;  %v2763_v44 = vor.u32 %v3698_v36, %v2762_v35  ;;  %1217 = vmatpush.bf16.msra.mxu1 %v3051_v33  ;;  %v2767_v46 = vor.u32 %v3694_v40, %v2764_v41  ;;  %1243 = vmatpush.bf16.msra.mxu3 %v3055_v38  ;;  %v3719_v33 = vld [vmem:[#allocation7 + $0x1cc] sm:$0xf]  ;;  %v2867_v40 = vor.u32 %v3723_v29, %v2866_v28 }
  0x41   : > { %v3762_v39 = vld [vmem:[#allocation7 + $0x31c] sm:$0xf0]  ;;  %v3020_v43 = vld [vmem:[#allocation7 + $0x320] sm:$0xf0]  ;;  %v2868_v34 = vld [vmem:[#allocation7 + $0x1e8] sm:$0xf0] }
  0x42   : > { %v3019_v45 = vor.u32 %v3762_v39, %v3018_v37  ;;  %v2730_v47 = vld [vmem:[#allocation7 + $0xc0] sm:$0xf]  ;;  %v3023_v50 = vor.u32 %v3758_v42, %v3020_v43  ;;  %v3686_v52 = vld [vmem:[#allocation7 + $0xc4] sm:$0xf]  ;;  %1205 = vmatpush.bf16.msra.mxu0 %v2763_v44  ;;  %1231 = vmatpush.bf16.msra.mxu2 %v2767_v46  ;;  %v3783_v37 = vld [vmem:[#allocation7 + $0x3cc] sm:$0xf]  ;;  %v3123_v42 = vor.u32 %v3787_v32, %v3122_v30 }
  0x43   : > { %v3690_v48 = vld [vmem:[#allocation7 + $0xdc] sm:$0xf0]  ;;  %v2732_v53 = vld [vmem:[#allocation7 + $0xe0] sm:$0xf0]  ;;  %v3124_v38 = vld [vmem:[#allocation7 + $0x3e8] sm:$0xf0]  ;;  %v2871_v43 = vor.u32 %v3719_v33, %v2868_v34 }
  0x44   : > { %v2986_v49 = vld [vmem:[#allocation7 + $0x2c0] sm:$0xf]  ;;  %v3750_v54 = vld [vmem:[#allocation7 + $0x2c4] sm:$0xf]  ;;  %v2731_v56 = vor.u32 %v3690_v48, %v2730_v47  ;;  %1218 = vmatpush.bf16.msra.mxu1 %v3019_v45  ;;  %v2735_v58 = vor.u32 %v3686_v52, %v2732_v53  ;;  %1244 = vmatpush.bf16.msra.mxu3 %v3023_v50  ;;  %v2834_v41 = vld [vmem:[#allocation7 + $0x188] sm:$0xf]  ;;  %v3127_v47 = vor.u32 %v3783_v37, %v3124_v38 }
  0x45   : > { %v3754_v51 = vld [vmem:[#allocation7 + $0x2dc] sm:$0xf0]  ;;  %v2988_v55 = vld [vmem:[#allocation7 + $0x2e0] sm:$0xf0]  ;;  %v3715_v44 = vld [vmem:[#allocation7 + $0x1a4] sm:$0xf0] }
  0x46   : > { %v2987_v57 = vor.u32 %v3754_v51, %v2986_v49  ;;  %v2698_v59 = vld [vmem:[#allocation7 + $0x80] sm:$0xf]  ;;  %v2991_v62 = vor.u32 %v3750_v54, %v2988_v55  ;;  %v3678_v0 = vld [vmem:[#allocation7 + $0x84] sm:$0xf]  ;;  %1206 = vmatpush.bf16.msra.mxu0 %v2731_v56  ;;  %1232 = vmatpush.bf16.msra.mxu2 %v2735_v58  ;;  %v3090_v45 = vld [vmem:[#allocation7 + $0x388] sm:$0xf]  ;;  %v2835_v54 = vor.u32 %v3715_v44, %v2834_v41 }
  0x47   : > { %v3682_v60 = vld [vmem:[#allocation7 + $0x9c] sm:$0xf0]  ;;  %v2700_v1 = vld [vmem:[#allocation7 + $0xa0] sm:$0xf0]  ;;  %v3779_v46 = vld [vmem:[#allocation7 + $0x3a4] sm:$0xf0] }
  0x48   : > { %v2954_v61 = vld [vmem:[#allocation7 + $0x280] sm:$0xf]  ;;  %v3742_v2 = vld [vmem:[#allocation7 + $0x284] sm:$0xf]  ;;  %v2699_v4 = vor.u32 %v3682_v60, %v2698_v59  ;;  %1219 = vmatpush.bf16.msra.mxu1 %v2987_v57  ;;  %v2703_v6 = vor.u32 %v3678_v0, %v2700_v1  ;;  %1245 = vmatpush.bf16.msra.mxu3 %v2991_v62  ;;  %v3711_v48 = vld [vmem:[#allocation7 + $0x18c] sm:$0xf]  ;;  %v3091_v56 = vor.u32 %v3779_v46, %v3090_v45 }
  0x49   : > { %v3746_v63 = vld [vmem:[#allocation7 + $0x29c] sm:$0xf0]  ;;  %v2956_v3 = vld [vmem:[#allocation7 + $0x2a0] sm:$0xf0]  ;;  %v2836_v49 = vld [vmem:[#allocation7 + $0x1a8] sm:$0xf0] }
  0x4a   : > { %v2955_v5 = vor.u32 %v3746_v63, %v2954_v61  ;;  %v2666_v7 = vld [vmem:[#allocation7 + $0x40] sm:$0xf]  ;;  %v2959_v10 = vor.u32 %v3742_v2, %v2956_v3  ;;  %v3670_v12 = vld [vmem:[#allocation7 + $0x44] sm:$0xf]  ;;  %1207 = vmatpush.bf16.msra.mxu0 %v2699_v4  ;;  %1233 = vmatpush.bf16.msra.mxu2 %v2703_v6  ;;  %v3775_v50 = vld [vmem:[#allocation7 + $0x38c] sm:$0xf]  ;;  %v2839_v57 = vor.u32 %v3711_v48, %v2836_v49 }
  0x4b   : > { %v3674_v8 = vld [vmem:[#allocation7 + $0x5c] sm:$0xf0]  ;;  %v2668_v13 = vld [vmem:[#allocation7 + $0x60] sm:$0xf0]  ;;  %v3092_v51 = vld [vmem:[#allocation7 + $0x3a8] sm:$0xf0] }
  0x4c   : > { %v2922_v9 = vld [vmem:[#allocation7 + $0x240] sm:$0xf]  ;;  %v3734_v14 = vld [vmem:[#allocation7 + $0x244] sm:$0xf]  ;;  %v2667_v16 = vor.u32 %v3674_v8, %v2666_v7  ;;  %1220 = vmatpush.bf16.msra.mxu1 %v2955_v5  ;;  %v2671_v20 = vor.u32 %v3670_v12, %v2668_v13  ;;  %1246 = vmatpush.bf16.msra.mxu3 %v2959_v10  ;;  %v405_v53 = vld [vmem:[%s4440_s14 + $0x8] sm:$0xff]  ;;  %v3095_v61 = vor.u32 %v3775_v50, %v3092_v51 }
  0x4d   : > { %v3738_v11 = vld [vmem:[#allocation7 + $0x25c] sm:$0xf0]  ;;  %v2924_v15 = vld [vmem:[#allocation7 + $0x260] sm:$0xf0]  ;;  %v2802_v58 = vld [vmem:[#allocation7 + $0x148] sm:$0xf] }
  0x4e   : > { %v2634_v17 = vld [vmem:[#allocation7] sm:$0xf]  ;;  %v2923_v19 = vor.u32 %v3738_v11, %v2922_v9  ;;  %v3662_v23 = vld [vmem:[#allocation7 + $0x4] sm:$0xf]  ;;  %v2927_v24 = vor.u32 %v3734_v14, %v2924_v15  ;;  %1208 = vmatpush.bf16.msra.mxu0 %v2667_v16  ;;  %1234 = vmatpush.bf16.msra.mxu2 %v2671_v20  ;;  %v3707_v59 = vld [vmem:[#allocation7 + $0x164] sm:$0xf0] }
  0x4f   : > { %v3666_v18 = vld [vmem:[#allocation7 + $0x1c] sm:$0xf0]  ;;  %v2636_v25 = vld [vmem:[#allocation7 + $0x20] sm:$0xf0]  ;;  %v3058_v60 = vld [vmem:[#allocation7 + $0x348] sm:$0xf]  ;;  %v2803_v5 = vor.u32 %v3707_v59, %v2802_v58 }
  0x50   : > { %v2890_v21 = vld [vmem:[#allocation7 + $0x200] sm:$0xf]  ;;  %v3726_v26 = vld [vmem:[#allocation7 + $0x204] sm:$0xf]  ;;  %v2635_v31 = vor.u32 %v3666_v18, %v2634_v17  ;;  %1221 = vmatpush.bf16.msra.mxu1 %v2923_v19  ;;  %v2639_v36 = vor.u32 %v3662_v23, %v2636_v25  ;;  %1247 = vmatpush.bf16.msra.mxu3 %v2927_v24  ;;  %v3771_v62 = vld [vmem:[#allocation7 + $0x364] sm:$0xf0] }
  0x51   : > { %v3730_v22 = vld [vmem:[#allocation7 + $0x21c] sm:$0xf0]  ;;  %v2892_v27 = vld [vmem:[#allocation7 + $0x220] sm:$0xf0]  ;;  %v3703_v63 = vld [vmem:[#allocation7 + $0x14c] sm:$0xf]  ;;  %v3059_v8 = vor.u32 %v3771_v62, %v3058_v60 }
  0x52   : > { %v2891_v35 = vor.u32 %v3730_v22, %v2890_v21  ;;  %v2895_v39 = vor.u32 %v3726_v26, %v2892_v27  ;;  %1209 = vmatpush.bf16.msra.mxu0 %v2635_v31  ;;  %1235 = vmatpush.bf16.msra.mxu2 %v2639_v36  ;;  %v404_v52 = vld [vmem:[%s4440_s14] sm:$0xff]  ;;  %v2804_v0 = vld [vmem:[#allocation7 + $0x168] sm:$0xf0]  ;;  %v2770_v10 = vld [vmem:[#allocation7 + $0x108] sm:$0xf] }
  0x53   : > { %v406_v55 = vpack.c.bf16 %v405_v53, %v404_v52  ;;  %v3767_v3 = vld [vmem:[#allocation7 + $0x34c] sm:$0xf]  ;;  %v2807_v9 = vor.u32 %v3703_v63, %v2804_v0  ;;  %v3699_v11 = vld [vmem:[#allocation7 + $0x124] sm:$0xf0] }
  0x54   : > { %1222 = vmatpush.bf16.msra.mxu1 %v2891_v35  ;;  %1248 = vmatpush.bf16.msra.mxu3 %v2895_v39  ;;  %v3060_v4 = vld [vmem:[#allocation7 + $0x368] sm:$0xf0]  ;;  %v3026_v12 = vld [vmem:[#allocation7 + $0x308] sm:$0xf]  ;;  %v2771_v19 = vor.u32 %v3699_v11, %v2770_v10  ;;  %v3720_v10 = vld [vmem:[#allocation7 + $0x1d4] sm:$0xf] }
  0x55   : > { %v556_v1 = vunpack.c.l.b16 %v406_v55  ;;  %v557_v2 = vunpack.c.h.b16 %v406_v55  ;;  %v3063_v13 = vor.u32 %v3767_v3, %v3060_v4  ;;  %v3763_v14 = vld [vmem:[#allocation7 + $0x324] sm:$0xf0]  ;;  %v3695_v15 = vld [vmem:[#allocation7 + $0x10c] sm:$0xf]  ;;  %v2874_v3 = vld [vmem:[#allocation7 + $0x1d0] sm:$0xf] }
  0x56   : > { %1254 = vmatpush.bf16.msrb.mxu0 %v2867_v40  ;;  %1280 = vmatpush.bf16.msrb.mxu2 %v2871_v43  ;;  %v2772_v16 = vld [vmem:[#allocation7 + $0x128] sm:$0xf0]  ;;  %v3027_v20 = vor.u32 %v3763_v14, %v3026_v12  ;;  %v2738_v22 = vld [vmem:[#allocation7 + $0xc8] sm:$0xf]  ;;  %v3724_v4 = vld [vmem:[#allocation7 + $0x1ec] sm:$0xf0] }
  0x57   : > { %v4456_v6 = vpack.c.b16 %v556_v1, %v556_v1  ;;  %v4458_v7 = vpack.c.b16 %v557_v2, %v557_v2  ;;  %v3759_v17 = vld [vmem:[#allocation7 + $0x30c] sm:$0xf]  ;;  %v2775_v21 = vor.u32 %v3695_v15, %v2772_v16  ;;  %v3691_v23 = vld [vmem:[#allocation7 + $0xe4] sm:$0xf0]  ;;  %v2876_v11 = vld [vmem:[#allocation7 + $0x1f0] sm:$0xf0] }
  0x58   : > { %1267 = vmatpush.bf16.msrb.mxu1 %v3123_v42  ;;  %1293 = vmatpush.bf16.msrb.mxu3 %v3127_v47  ;;  %v3028_v18 = vld [vmem:[#allocation7 + $0x328] sm:$0xf0]  ;;  %v2994_v24 = vld [vmem:[#allocation7 + $0x2c8] sm:$0xf]  ;;  %v2739_v31 = vor.u32 %v3691_v23, %v2738_v22  ;;  %v3784_v14 = vld [vmem:[#allocation7 + $0x3d4] sm:$0xf] }
  0x59   : > { %1210 = vmatmul.bf16.vlgmr.msra.gmra.mxu0 %v4456_v6  ;;  %1236 = vmatmul.bf16.vlgmr.msra.gmra.mxu2 %v4456_v6  ;;  %v3031_v25 = vor.u32 %v3759_v17, %v3028_v18  ;;  %v3755_v26 = vld [vmem:[#allocation7 + $0x2e4] sm:$0xf0]  ;;  %v3687_v27 = vld [vmem:[#allocation7 + $0xcc] sm:$0xf]  ;;  %v3132_v15 = vld [vmem:[#allocation7 + $0x3f0] sm:$0xf0]  ;;  %v2875_v17 = vor.u32 %v3724_v4, %v2874_v3 }
  0x5a   : > { %1255 = vmatpush.bf16.msrb.mxu0 %v2835_v54  ;;  %1281 = vmatpush.bf16.msrb.mxu2 %v2839_v57  ;;  %v2740_v28 = vld [vmem:[#allocation7 + $0xe8] sm:$0xf0]  ;;  %v2995_v32 = vor.u32 %v3755_v26, %v2994_v24  ;;  %v2706_v34 = vld [vmem:[#allocation7 + $0x88] sm:$0xf]  ;;  %v3098_v22 = vld [vmem:[#allocation7 + $0x390] sm:$0xf]  ;;  %v3135_v23 = vor.u32 %v3784_v14, %v3132_v15 }
  0x5b   : > { %1223 = vmatmul.bf16.vlgmr.msra.gmra.mxu1 %v4458_v7  ;;  %1249 = vmatmul.bf16.vlgmr.msra.gmra.mxu3 %v4458_v7  ;;  %v3751_v29 = vld [vmem:[#allocation7 + $0x2cc] sm:$0xf]  ;;  %v2743_v33 = vor.u32 %v3687_v27, %v2740_v28  ;;  %v3683_v35 = vld [vmem:[#allocation7 + $0xa4] sm:$0xf0]  ;;  %v3780_v24 = vld [vmem:[#allocation7 + $0x3ac] sm:$0xf0] }
  0x5c   : > { %1268 = vmatpush.bf16.msrb.mxu1 %v3091_v56  ;;  %1294 = vmatpush.bf16.msrb.mxu3 %v3095_v61  ;;  %v2996_v30 = vld [vmem:[#allocation7 + $0x2e8] sm:$0xf0]  ;;  %v2962_v36 = vld [vmem:[#allocation7 + $0x288] sm:$0xf]  ;;  %v2707_v43 = vor.u32 %v3683_v35, %v2706_v34  ;;  %v2844_v26 = vld [vmem:[#allocation7 + $0x1b0] sm:$0xf0] }
  0x5d   : > { %v2999_v37 = vor.u32 %v3751_v29, %v2996_v30  ;;  %v3747_v38 = vld [vmem:[#allocation7 + $0x2a4] sm:$0xf0]  ;;  %v3679_v39 = vld [vmem:[#allocation7 + $0x8c] sm:$0xf]  ;;  %v3776_v27 = vld [vmem:[#allocation7 + $0x394] sm:$0xf]  ;;  %v3099_v30 = vor.u32 %v3780_v24, %v3098_v22 }
  0x5e   : > { %1256 = vmatpush.bf16.msrb.mxu0 %v2803_v5  ;;  %1282 = vmatpush.bf16.msrb.mxu2 %v2807_v9  ;;  %v2708_v40 = vld [vmem:[#allocation7 + $0xa8] sm:$0xf0]  ;;  %v2963_v44 = vor.u32 %v3747_v38, %v2962_v36  ;;  %v2674_v46 = vld [vmem:[#allocation7 + $0x48] sm:$0xf]  ;;  %v3130_v5 = vld [vmem:[#allocation7 + $0x3d0] sm:$0xf] }
  0x5f   : > { %v3743_v41 = vld [vmem:[#allocation7 + $0x28c] sm:$0xf]  ;;  %v2711_v45 = vor.u32 %v3679_v39, %v2708_v40  ;;  %v3675_v47 = vld [vmem:[#allocation7 + $0x64] sm:$0xf0]  ;;  %v3788_v9 = vld [vmem:[#allocation7 + $0x3ec] sm:$0xf0] }
  0x60   : > { %1269 = vmatpush.bf16.msrb.mxu1 %v3059_v8  ;;  %1295 = vmatpush.bf16.msrb.mxu3 %v3063_v13  ;;  %v2964_v42 = vld [vmem:[#allocation7 + $0x2a8] sm:$0xf0]  ;;  %v2930_v48 = vld [vmem:[#allocation7 + $0x248] sm:$0xf]  ;;  %v2675_v55 = vor.u32 %v3675_v47, %v2674_v46  ;;  %v3131_v18 = vor.u32 %v3788_v9, %v3130_v5  ;;  %v3100_v28 = vld [vmem:[#allocation7 + $0x3b0] sm:$0xf0] }
  0x61   : > { %v2967_v49 = vor.u32 %v3743_v41, %v2964_v42  ;;  %v3739_v50 = vld [vmem:[#allocation7 + $0x264] sm:$0xf0]  ;;  %v3671_v51 = vld [vmem:[#allocation7 + $0x4c] sm:$0xf]  ;;  %v3066_v34 = vld [vmem:[#allocation7 + $0x350] sm:$0xf]  ;;  %v3103_v35 = vor.u32 %v3776_v27, %v3100_v28 }
  0x62   : > { %1257 = vmatpush.bf16.msrb.mxu0 %v2771_v19  ;;  %1283 = vmatpush.bf16.msrb.mxu2 %v2775_v21  ;;  %v2676_v52 = vld [vmem:[#allocation7 + $0x68] sm:$0xf0]  ;;  %v2642_v56 = vld [vmem:[#allocation7 + $0x8] sm:$0xf]  ;;  %v2931_v58 = vor.u32 %v3739_v50, %v2930_v48  ;;  %v2879_v19 = vor.u32 %v3720_v10, %v2876_v11  ;;  %v3716_v21 = vld [vmem:[#allocation7 + $0x1ac] sm:$0xf0] }
  0x63   : > { %v3735_v53 = vld [vmem:[#allocation7 + $0x24c] sm:$0xf]  ;;  %v3667_v57 = vld [vmem:[#allocation7 + $0x24] sm:$0xf0]  ;;  %v2679_v59 = vor.u32 %v3671_v51, %v2676_v52  ;;  %v3772_v36 = vld [vmem:[#allocation7 + $0x36c] sm:$0xf0] }
  0x64   : > { %1270 = vmatpush.bf16.msrb.mxu1 %v3027_v20  ;;  %1296 = vmatpush.bf16.msrb.mxu3 %v3031_v25  ;;  %v2932_v54 = vld [vmem:[#allocation7 + $0x268] sm:$0xf0]  ;;  %v2898_v60 = vld [vmem:[#allocation7 + $0x208] sm:$0xf]  ;;  %v2643_v8 = vor.u32 %v3667_v57, %v2642_v56  ;;  %v2842_v20 = vld [vmem:[#allocation7 + $0x190] sm:$0xf]  ;;  %v3067_v42 = vor.u32 %v3772_v36, %v3066_v34 }
  0x65   : > { %v3731_v61 = vld [vmem:[#allocation7 + $0x224] sm:$0xf0]  ;;  %v3663_v62 = vld [vmem:[#allocation7 + $0xc] sm:$0xf]  ;;  %v2935_v63 = vor.u32 %v3735_v53, %v2932_v54  ;;  %v3712_v25 = vld [vmem:[#allocation7 + $0x194] sm:$0xf]  ;;  %v2843_v29 = vor.u32 %v3716_v21, %v2842_v20 }
  0x66   : > { %1258 = vmatpush.bf16.msrb.mxu0 %v2739_v31  ;;  %1284 = vmatpush.bf16.msrb.mxu2 %v2743_v33  ;;  %v2644_v0 = vld [vmem:[#allocation7 + $0x28] sm:$0xf0]  ;;  %v2899_v12 = vor.u32 %v3731_v61, %v2898_v60  ;;  %v2847_v31 = vor.u32 %v3712_v25, %v2844_v26  ;;  %v3708_v33 = vld [vmem:[#allocation7 + $0x16c] sm:$0xf0]  ;;  %v2812_v38 = vld [vmem:[#allocation7 + $0x170] sm:$0xf0] }
  0x67   : > { %v3727_v1 = vld [vmem:[#allocation7 + $0x20c] sm:$0xf]  ;;  %v2647_v13 = vor.u32 %v3663_v62, %v2644_v0  ;;  %v3768_v39 = vld [vmem:[#allocation7 + $0x354] sm:$0xf]  ;;  %v3034_v46 = vld [vmem:[#allocation7 + $0x310] sm:$0xf] }
  0x68   : > { %1271 = vmatpush.bf16.msrb.mxu1 %v2995_v32  ;;  %1297 = vmatpush.bf16.msrb.mxu3 %v2999_v37  ;;  %v2900_v2 = vld [vmem:[#allocation7 + $0x228] sm:$0xf0]  ;;  %v2810_v32 = vld [vmem:[#allocation7 + $0x150] sm:$0xf]  ;;  %v3704_v37 = vld [vmem:[#allocation7 + $0x154] sm:$0xf] }
  0x69   : > { %v2903_v16 = vor.u32 %v3727_v1, %v2900_v2  ;;  %v3068_v40 = vld [vmem:[#allocation7 + $0x370] sm:$0xf0]  ;;  %v2811_v41 = vor.u32 %v3708_v33, %v2810_v32  ;;  %v3764_v48 = vld [vmem:[#allocation7 + $0x32c] sm:$0xf0] }
  0x6a   : > { %1259 = vmatpush.bf16.msrb.mxu0 %v2707_v43  ;;  %1285 = vmatpush.bf16.msrb.mxu2 %v2711_v45  ;;  %v2815_v43 = vor.u32 %v3704_v37, %v2812_v38  ;;  %v3700_v45 = vld [vmem:[#allocation7 + $0x12c] sm:$0xf0]  ;;  %v3071_v47 = vor.u32 %v3768_v39, %v3068_v40  ;;  %v2780_v50 = vld [vmem:[#allocation7 + $0x130] sm:$0xf0]  ;;  %v3035_v54 = vor.u32 %v3764_v48, %v3034_v46  ;;  %v2882_v39 = vld [vmem:[#allocation7 + $0x1d8] sm:$0xf] }
  0x6b   : > { %v3760_v51 = vld [vmem:[#allocation7 + $0x314] sm:$0xf]  ;;  %v2746_v56 = vld [vmem:[#allocation7 + $0xd0] sm:$0xf]  ;;  %v3725_v40 = vld [vmem:[#allocation7 + $0x1f4] sm:$0xf0] }
  0x6c   : > { %1272 = vmatpush.bf16.msrb.mxu1 %v2963_v44  ;;  %1298 = vmatpush.bf16.msrb.mxu3 %v2967_v49  ;;  %v2778_v44 = vld [vmem:[#allocation7 + $0x110] sm:$0xf]  ;;  %v3696_v49 = vld [vmem:[#allocation7 + $0x114] sm:$0xf]  ;;  %v3785_v48 = vld [vmem:[#allocation7 + $0x3dc] sm:$0xf] }
  0x6d   : > { %v3036_v52 = vld [vmem:[#allocation7 + $0x330] sm:$0xf0]  ;;  %v2779_v53 = vor.u32 %v3700_v45, %v2778_v44  ;;  %v3692_v57 = vld [vmem:[#allocation7 + $0xec] sm:$0xf0]  ;;  %v3721_v44 = vld [vmem:[#allocation7 + $0x1dc] sm:$0xf] }
  0x6e   : > { %1260 = vmatpush.bf16.msrb.mxu0 %v2675_v55  ;;  %1286 = vmatpush.bf16.msrb.mxu2 %v2679_v59  ;;  %v2783_v55 = vor.u32 %v3696_v49, %v2780_v50  ;;  %v3039_v59 = vor.u32 %v3760_v51, %v3036_v52  ;;  %v3756_v60 = vld [vmem:[#allocation7 + $0x2ec] sm:$0xf0]  ;;  %v3688_v61 = vld [vmem:[#allocation7 + $0xd4] sm:$0xf]  ;;  %v2747_v1 = vor.u32 %v3692_v57, %v2746_v56  ;;  %v2884_v45 = vld [vmem:[#allocation7 + $0x1f8] sm:$0xf0] }
  0x6f   : > { %v2748_v62 = vld [vmem:[#allocation7 + $0xf0] sm:$0xf0]  ;;  %v2714_v4 = vld [vmem:[#allocation7 + $0x90] sm:$0xf]  ;;  %v3140_v49 = vld [vmem:[#allocation7 + $0x3f8] sm:$0xf0]  ;;  %v2883_v51 = vor.u32 %v3725_v40, %v2882_v39 }
  0x70   : > { %1273 = vmatpush.bf16.msrb.mxu1 %v2931_v58  ;;  %1299 = vmatpush.bf16.msrb.mxu3 %v2935_v63  ;;  %v3002_v58 = vld [vmem:[#allocation7 + $0x2d0] sm:$0xf]  ;;  %v3752_v63 = vld [vmem:[#allocation7 + $0x2d4] sm:$0xf]  ;;  %v2751_v3 = vor.u32 %v3688_v61, %v2748_v62  ;;  %v3106_v56 = vld [vmem:[#allocation7 + $0x398] sm:$0xf]  ;;  %v3143_v57 = vor.u32 %v3785_v48, %v3140_v49 }
  0x71   : > { %v3004_v0 = vld [vmem:[#allocation7 + $0x2f0] sm:$0xf0]  ;;  %v3003_v2 = vor.u32 %v3756_v60, %v3002_v58  ;;  %v3684_v5 = vld [vmem:[#allocation7 + $0xac] sm:$0xf0]  ;;  %v3781_v58 = vld [vmem:[#allocation7 + $0x3b4] sm:$0xf0] }
  0x72   : > { %1261 = vmatpush.bf16.msrb.mxu0 %v2643_v8  ;;  %1287 = vmatpush.bf16.msrb.mxu2 %v2647_v13  ;;  %v2970_v8 = vld [vmem:[#allocation7 + $0x290] sm:$0xf]  ;;  %v3007_v9 = vor.u32 %v3752_v63, %v3004_v0  ;;  %v3680_v11 = vld [vmem:[#allocation7 + $0x94] sm:$0xf]  ;;  %v2715_v15 = vor.u32 %v3684_v5, %v2714_v4  ;;  %v2852_v60 = vld [vmem:[#allocation7 + $0x1b8] sm:$0xf0]  ;;  %v3107_v0 = vor.u32 %v3781_v58, %v3106_v56 }
  0x73   : > { %v3748_v10 = vld [vmem:[#allocation7 + $0x2ac] sm:$0xf0]  ;;  %v3744_v13 = vld [vmem:[#allocation7 + $0x294] sm:$0xf]  ;;  %v3777_v61 = vld [vmem:[#allocation7 + $0x39c] sm:$0xf] }
  0x74   : > { %1274 = vmatpush.bf16.msrb.mxu1 %v2899_v12  ;;  %1300 = vmatpush.bf16.msrb.mxu3 %v2903_v16  ;;  %v2716_v12 = vld [vmem:[#allocation7 + $0xb0] sm:$0xf0]  ;;  %v2971_v16 = vor.u32 %v3748_v10, %v2970_v8  ;;  %v2938_v20 = vld [vmem:[#allocation7 + $0x250] sm:$0xf]  ;;  %v3108_v62 = vld [vmem:[#allocation7 + $0x3b8] sm:$0xf0] }
  0x75   : > { %1262 = vmatmul.bf16.vlgmr.msrb.gmra.mxu0 %v4456_v6  ;;  %1288 = vmatmul.bf16.vlgmr.msrb.gmra.mxu2 %v4456_v6  ;;  %v2972_v14 = vld [vmem:[#allocation7 + $0x2b0] sm:$0xf0]  ;;  %v3740_v22 = vld [vmem:[#allocation7 + $0x26c] sm:$0xf0]  ;;  %v3074_v4 = vld [vmem:[#allocation7 + $0x358] sm:$0xf]  ;;  %v3111_v5 = vor.u32 %v3777_v61, %v3108_v62 }
  0x76   : > { %1306 = vmatpush.bf16.msra.mxu0 %v2875_v17  ;;  %1332 = vmatpush.bf16.msra.mxu2 %v2879_v19  ;;  %v2719_v17 = vor.u32 %v3680_v11, %v2716_v12  ;;  %v3676_v19 = vld [vmem:[#allocation7 + $0x6c] sm:$0xf0]  ;;  %v2975_v21 = vor.u32 %v3744_v13, %v2972_v14  ;;  %v2684_v24 = vld [vmem:[#allocation7 + $0x70] sm:$0xf0]  ;;  %v3773_v8 = vld [vmem:[#allocation7 + $0x374] sm:$0xf0] }
  0x77   : > { %1275 = vmatmul.bf16.vlgmr.msrb.gmra.mxu1 %v4458_v7  ;;  %1301 = vmatmul.bf16.vlgmr.msrb.gmra.mxu3 %v4458_v7  ;;  %v3736_v25 = vld [vmem:[#allocation7 + $0x254] sm:$0xf]  ;;  %v2650_v28 = vld [vmem:[#allocation7 + $0x10] sm:$0xf]  ;;  %v2820_v10 = vld [vmem:[#allocation7 + $0x178] sm:$0xf0]  ;;  %v3075_v14 = vor.u32 %v3773_v8, %v3074_v4 }
  0x78   : > { %1319 = vmatpush.bf16.msra.mxu1 %v3131_v18  ;;  %1345 = vmatpush.bf16.msra.mxu3 %v3135_v23  ;;  %v2682_v18 = vld [vmem:[#allocation7 + $0x50] sm:$0xf]  ;;  %v3672_v23 = vld [vmem:[#allocation7 + $0x54] sm:$0xf]  ;;  %v3769_v11 = vld [vmem:[#allocation7 + $0x35c] sm:$0xf] }
  0x79   : > { %v2940_v26 = vld [vmem:[#allocation7 + $0x270] sm:$0xf0]  ;;  %v2683_v27 = vor.u32 %v3676_v19, %v2682_v18  ;;  %v2906_v32 = vld [vmem:[#allocation7 + $0x210] sm:$0xf]  ;;  %v3076_v12 = vld [vmem:[#allocation7 + $0x378] sm:$0xf0] }
  0x7a   : > { %1307 = vmatpush.bf16.msra.mxu0 %v2843_v29  ;;  %1333 = vmatpush.bf16.msra.mxu2 %v2847_v31  ;;  %v3668_v29 = vld [vmem:[#allocation7 + $0x2c] sm:$0xf0]  ;;  %v2687_v31 = vor.u32 %v3672_v23, %v2684_v24  ;;  %v3664_v34 = vld [vmem:[#allocation7 + $0x14] sm:$0xf]  ;;  %v3042_v18 = vld [vmem:[#allocation7 + $0x318] sm:$0xf]  ;;  %v3079_v19 = vor.u32 %v3769_v11, %v3076_v12 }
  0x7b   : > { %v3732_v33 = vld [vmem:[#allocation7 + $0x22c] sm:$0xf0]  ;;  %v2652_v36 = vld [vmem:[#allocation7 + $0x30] sm:$0xf0]  ;;  %v3761_v23 = vld [vmem:[#allocation7 + $0x31c] sm:$0xf] }
  0x7c   : > { %1320 = vmatpush.bf16.msra.mxu1 %v3099_v30  ;;  %1346 = vmatpush.bf16.msra.mxu3 %v3103_v35  ;;  %v2939_v30 = vor.u32 %v3740_v22, %v2938_v20  ;;  %v2943_v35 = vor.u32 %v3736_v25, %v2940_v26  ;;  %v3728_v37 = vld [vmem:[#allocation7 + $0x214] sm:$0xf]  ;;  %v2907_v46 = vor.u32 %v3732_v33, %v2906_v32  ;;  %v3765_v20 = vld [vmem:[#allocation7 + $0x334] sm:$0xf0]  ;;  %v2788_v22 = vld [vmem:[#allocation7 + $0x138] sm:$0xf0] }
  0x7d   : > { %v2908_v38 = vld [vmem:[#allocation7 + $0x230] sm:$0xf0]  ;;  %v3044_v24 = vld [vmem:[#allocation7 + $0x338] sm:$0xf0]  ;;  %v3043_v26 = vor.u32 %v3765_v20, %v3042_v18  ;;  %v3757_v32 = vld [vmem:[#allocation7 + $0x2f4] sm:$0xf0] }
  0x7e   : > { %1308 = vmatpush.bf16.msra.mxu0 %v2811_v41  ;;  %1334 = vmatpush.bf16.msra.mxu2 %v2815_v43  ;;  %v3138_v41 = vld [vmem:[#allocation7 + $0x3d8] sm:$0xf]  ;;  %v2911_v50 = vor.u32 %v3728_v37, %v2908_v38  ;;  %v3689_v33 = vld [vmem:[#allocation7 + $0xdc] sm:$0xf]  ;;  %v3805_v12 = vld [vmem:[#allocation10 + $0x74] sm:$0xf0] }
  0x7f   : > { %v3789_v43 = vld [vmem:[#allocation7 + $0x3f4] sm:$0xf0]  ;;  %v2980_v48 = vld [vmem:[#allocation7 + $0x2b8] sm:$0xf0] }
  0x80   : > { %1321 = vmatpush.bf16.msra.mxu1 %v3067_v42  ;;  %1347 = vmatpush.bf16.msra.mxu3 %v3071_v47  ;;  %v2651_v42 = vor.u32 %v3668_v29, %v2650_v28  ;;  %v2655_v47 = vor.u32 %v3664_v34, %v2652_v36  ;;  %v3139_v52 = vor.u32 %v3789_v43, %v3138_v41  ;;  %v2754_v28 = vld [vmem:[#allocation7 + $0xd8] sm:$0xf]  ;;  %v2756_v34 = vld [vmem:[#allocation7 + $0xf8] sm:$0xf0] }
  0x81   : > { %v3693_v29 = vld [vmem:[#allocation7 + $0xf4] sm:$0xf0]  ;;  %v3012_v36 = vld [vmem:[#allocation7 + $0x2f8] sm:$0xf0]  ;;  %v2759_v39 = vor.u32 %v3689_v33, %v2756_v34 }
  0x82   : > { %1309 = vmatpush.bf16.msra.mxu0 %v2779_v53  ;;  %1335 = vmatpush.bf16.msra.mxu2 %v2783_v55  ;;  %v2887_v53 = vor.u32 %v3721_v44, %v2884_v45  ;;  %v3717_v55 = vld [vmem:[#allocation7 + $0x1b4] sm:$0xf0]  ;;  %v2755_v37 = vor.u32 %v3693_v29, %v2754_v28  ;;  %v3681_v45 = vld [vmem:[#allocation7 + $0x9c] sm:$0xf]  ;;  %v3322_v29 = vld [vmem:[#allocation10 + $0x160] sm:$0xf] }
  0x83   : > { %v2722_v40 = vld [vmem:[#allocation7 + $0x98] sm:$0xf]  ;;  %v2692_v58 = vld [vmem:[#allocation7 + $0x78] sm:$0xf0] }
  0x84   : > { %1322 = vmatpush.bf16.msra.mxu1 %v3035_v54  ;;  %1348 = vmatpush.bf16.msra.mxu3 %v3039_v59  ;;  %v2850_v54 = vld [vmem:[#allocation7 + $0x198] sm:$0xf]  ;;  %v3713_v59 = vld [vmem:[#allocation7 + $0x19c] sm:$0xf] }
  0x85   : > { %v2851_v63 = vor.u32 %v3717_v55, %v2850_v54  ;;  %v3685_v41 = vld [vmem:[#allocation7 + $0xb4] sm:$0xf0]  ;;  %v2660_v8 = vld [vmem:[#allocation7 + $0x38] sm:$0xf0] }
  0x86   : > { %1310 = vmatpush.bf16.msra.mxu0 %v2747_v1  ;;  %1336 = vmatpush.bf16.msra.mxu2 %v2751_v3  ;;  %v2855_v1 = vor.u32 %v3713_v59, %v2852_v60  ;;  %v3709_v3 = vld [vmem:[#allocation7 + $0x174] sm:$0xf0]  ;;  %v2723_v49 = vor.u32 %v3685_v41, %v2722_v40  ;;  %v3737_v59 = vld [vmem:[#allocation7 + $0x25c] sm:$0xf]  ;;  %v3242_v41 = vld [vmem:[#allocation10 + $0xc0] sm:$0xf] }
  0x87   : > { %v3749_v44 = vld [vmem:[#allocation7 + $0x2b4] sm:$0xf0]  ;;  %v2948_v60 = vld [vmem:[#allocation7 + $0x278] sm:$0xf0] }
  0x88   : > { %1323 = vmatpush.bf16.msra.mxu1 %v3003_v2  ;;  %1349 = vmatpush.bf16.msra.mxu3 %v3007_v9  ;;  %v2818_v2 = vld [vmem:[#allocation7 + $0x158] sm:$0xf]  ;;  %v3705_v9 = vld [vmem:[#allocation7 + $0x15c] sm:$0xf]  ;;  %v2951_v4 = vor.u32 %v3737_v59, %v2948_v60  ;;  %v3793_v59 = vld [vmem:[#allocation10 + $0x14] sm:$0xf0] }
  0x89   : > { %v2819_v13 = vor.u32 %v3709_v3, %v2818_v2  ;;  %v2946_v54 = vld [vmem:[#allocation7 + $0x258] sm:$0xf] }
  0x8a   : > { %1311 = vmatpush.bf16.msra.mxu0 %v2715_v15  ;;  %1337 = vmatpush.bf16.msra.mxu2 %v2719_v17  ;;  %v2823_v15 = vor.u32 %v3705_v9, %v2820_v10  ;;  %v3701_v17 = vld [vmem:[#allocation7 + $0x134] sm:$0xf0]  ;;  %v3729_v9 = vld [vmem:[#allocation7 + $0x21c] sm:$0xf] }
  0x8b   : > { %v3741_v56 = vld [vmem:[#allocation7 + $0x274] sm:$0xf0]  ;;  %v2916_v10 = vld [vmem:[#allocation7 + $0x238] sm:$0xf0] }
  0x8c   : > { %1324 = vmatpush.bf16.msra.mxu1 %v2971_v16  ;;  %1350 = vmatpush.bf16.msra.mxu3 %v2975_v21  ;;  %v2786_v16 = vld [vmem:[#allocation7 + $0x118] sm:$0xf]  ;;  %v3697_v21 = vld [vmem:[#allocation7 + $0x11c] sm:$0xf]  ;;  %v2919_v18 = vor.u32 %v3729_v9, %v2916_v10  ;;  %v3831_v9 = vld [vmem:[#allocation10 + $0x144] sm:$0xf0] }
  0x8d   : > { %v2787_v25 = vor.u32 %v3701_v17, %v2786_v16  ;;  %v2658_v62 = vld [vmem:[#allocation7 + $0x18] sm:$0xf]  ;;  %v3791_v10 = vld [vmem:[#allocation10 + $0x4] sm:$0xf0] }
  0x8e   : > { %1312 = vmatpush.bf16.msra.mxu0 %v2683_v27  ;;  %1338 = vmatpush.bf16.msra.mxu2 %v2687_v31  ;;  %v2791_v27 = vor.u32 %v3697_v21, %v2788_v22  ;;  %v3047_v31 = vor.u32 %v3761_v23, %v3044_v24  ;;  %v2914_v2 = vld [vmem:[#allocation7 + $0x218] sm:$0xf]  ;;  %v3837_v21 = vld [vmem:[#allocation10 + $0x174] sm:$0xf0]  ;;  %v3194_v22 = vld [vmem:[#allocation10 + $0x60] sm:$0xf] }
  0x8f   : > { %v3733_v3 = vld [vmem:[#allocation7 + $0x234] sm:$0xf0]  ;;  %v3803_v23 = vld [vmem:[#allocation10 + $0x64] sm:$0xf0] }
  0x90   : > { %1325 = vmatpush.bf16.msra.mxu1 %v2939_v30  ;;  %1351 = vmatpush.bf16.msra.mxu3 %v2943_v35  ;;  %v3010_v30 = vld [vmem:[#allocation7 + $0x2d8] sm:$0xf]  ;;  %v3753_v35 = vld [vmem:[#allocation7 + $0x2dc] sm:$0xf]  ;;  %v2915_v16 = vor.u32 %v3733_v3, %v2914_v2  ;;  %v3195_v28 = vor.u32 %v3803_v23, %v3194_v22  ;;  %v3851_v2 = vld [vmem:[#allocation10 + $0x1e4] sm:$0xf0] }
  0x91   : > { %v3011_v38 = vor.u32 %v3757_v32, %v3010_v30  ;;  %v3015_v43 = vor.u32 %v3753_v35, %v3012_v36  ;;  %v3202_v11 = vld [vmem:[#allocation10 + $0x70] sm:$0xf]  ;;  %v3835_v30 = vld [vmem:[#allocation10 + $0x164] sm:$0xf0]  ;;  %v3801_v32 = vld [vmem:[#allocation10 + $0x54] sm:$0xf0] }
  0x92   : > { %1313 = vmatpush.bf16.msra.mxu0 %v2651_v42  ;;  %1339 = vmatpush.bf16.msra.mxu2 %v2655_v47  ;;  %v2978_v42 = vld [vmem:[#allocation7 + $0x298] sm:$0xf]  ;;  %v3745_v47 = vld [vmem:[#allocation7 + $0x29c] sm:$0xf]  ;;  %v3817_v35 = vld [vmem:[#allocation10 + $0xd4] sm:$0xf0]  ;;  %v3323_v36 = vor.u32 %v3835_v30, %v3322_v29 }
  0x93   : > { %v2983_v55 = vor.u32 %v3745_v47, %v2980_v48  ;;  %v3330_v20 = vld [vmem:[#allocation10 + $0x170] sm:$0xf]  ;;  %v3813_v47 = vld [vmem:[#allocation10 + $0xb4] sm:$0xf0]  ;;  %v3370_v29 = vld [vmem:[#allocation10 + $0x1c0] sm:$0xf] }
  0x94   : > { %1326 = vmatpush.bf16.msra.mxu1 %v2907_v46  ;;  %1352 = vmatpush.bf16.msra.mxu3 %v2911_v50  ;;  %v2724_v46 = vld [vmem:[#allocation7 + $0xb8] sm:$0xf0]  ;;  %v2979_v50 = vor.u32 %v3749_v44, %v2978_v42  ;;  %v3250_v34 = vld [vmem:[#allocation10 + $0xd0] sm:$0xf]  ;;  %v3815_v42 = vld [vmem:[#allocation10 + $0xc4] sm:$0xf0] }
  0x95   : > { %1314 = vmatmul.bf16.vlgmr.msra.gmra.mxu0 %v4456_v6  ;;  %1340 = vmatmul.bf16.vlgmr.msra.gmra.mxu2 %v4456_v6  ;;  %v3251_v40 = vor.u32 %v3817_v35, %v3250_v34  ;;  %v3170_v44 = vld [vmem:[#allocation10 + $0x30] sm:$0xf]  ;;  %v3853_v48 = vld [vmem:[#allocation10 + $0x1f4] sm:$0xf0]  ;;  %v3867_v30 = vld [vmem:[#allocation10 + $0x264] sm:$0xf0] }
  0x96   : > { %1358 = vmatpush.bf16.msrb.mxu0 %v2883_v51  ;;  %1384 = vmatpush.bf16.msrb.mxu2 %v2887_v53  ;;  %v2727_v51 = vor.u32 %v3681_v45, %v2724_v46  ;;  %v3677_v53 = vld [vmem:[#allocation7 + $0x74] sm:$0xf0]  ;;  %v3243_v45 = vor.u32 %v3815_v42, %v3242_v41  ;;  %v3883_v34 = vld [vmem:[#allocation10 + $0x2e4] sm:$0xf0]  ;;  %v3865_v41 = vld [vmem:[#allocation10 + $0x254] sm:$0xf0] }
  0x97   : > { %1327 = vmatmul.bf16.vlgmr.msra.gmra.mxu1 %v4458_v7  ;;  %1353 = vmatmul.bf16.vlgmr.msra.gmra.mxu3 %v4458_v7  ;;  %v3234_v46 = vld [vmem:[#allocation10 + $0xb0] sm:$0xf] }
  0x98   : > { %1371 = vmatpush.bf16.msrb.mxu1 %v3139_v52  ;;  %1397 = vmatpush.bf16.msrb.mxu3 %v3143_v57  ;;  %v2690_v52 = vld [vmem:[#allocation7 + $0x58] sm:$0xf]  ;;  %v3673_v57 = vld [vmem:[#allocation7 + $0x5c] sm:$0xf] }
  0x99   : > { %v2691_v61 = vor.u32 %v3677_v53, %v2690_v52  ;;  %v3795_v52 = vld [vmem:[#allocation10 + $0x24] sm:$0xf0]  ;;  %v3235_v53 = vor.u32 %v3813_v47, %v3234_v46  ;;  %v3298_v23 = vld [vmem:[#allocation10 + $0x130] sm:$0xf]  ;;  %v3434_v46 = vld [vmem:[#allocation10 + $0x240] sm:$0xf] }
  0x9a   : > { %1359 = vmatpush.bf16.msrb.mxu0 %v2851_v63  ;;  %1385 = vmatpush.bf16.msrb.mxu2 %v2855_v1  ;;  %v2947_v63 = vor.u32 %v3741_v56, %v2946_v54  ;;  %v3669_v1 = vld [vmem:[#allocation7 + $0x34] sm:$0xf0]  ;;  %v3226_v54 = vld [vmem:[#allocation10 + $0xa0] sm:$0xf]  ;;  %v3863_v47 = vld [vmem:[#allocation10 + $0x244] sm:$0xf0] }
  0x9c   : > { %1372 = vmatpush.bf16.msrb.mxu1 %v3107_v0  ;;  %1398 = vmatpush.bf16.msrb.mxu3 %v3111_v5  ;;  %v2695_v0 = vor.u32 %v3673_v57, %v2692_v58  ;;  %v3665_v5 = vld [vmem:[#allocation7 + $0x1c] sm:$0xf]  ;;  %v3154_v57 = vld [vmem:[#allocation10 + $0x10] sm:$0xf] }
  0x9d   : > { %v2663_v17 = vor.u32 %v3665_v5, %v2660_v8  ;;  %v3314_v58 = vld [vmem:[#allocation10 + $0x150] sm:$0xf]  ;;  %v3155_v5 = vor.u32 %v3793_v59, %v3154_v57  ;;  %v3146_v8 = vld [vmem:[#allocation10] sm:$0xf] }
  0x9e   : > { %1360 = vmatpush.bf16.msrb.mxu0 %v2819_v13  ;;  %1386 = vmatpush.bf16.msrb.mxu2 %v2823_v15  ;;  %v2659_v13 = vor.u32 %v3669_v1, %v2658_v62  ;;  %v3821_v15 = vld [vmem:[#allocation10 + $0xf4] sm:$0xf0]  ;;  %v3386_v1 = vld [vmem:[#allocation10 + $0x1e0] sm:$0xf]  ;;  %v3426_v57 = vld [vmem:[#allocation10 + $0x230] sm:$0xf] }
  0x9f   : > { %v3833_v62 = vld [vmem:[#allocation10 + $0x154] sm:$0xf0]  ;;  %v3387_v3 = vor.u32 %v3851_v2, %v3386_v1 }
  0xa0   : > { %1373 = vmatpush.bf16.msrb.mxu1 %v3075_v14  ;;  %1399 = vmatpush.bf16.msrb.mxu3 %v3079_v19  ;;  %v3266_v14 = vld [vmem:[#allocation10 + $0xf0] sm:$0xf]  ;;  %v3203_v19 = vor.u32 %v3805_v12, %v3202_v11  ;;  %v3869_v12 = vld [vmem:[#allocation10 + $0x274] sm:$0xf0] }
  0xa1   : > { %v3267_v24 = vor.u32 %v3821_v15, %v3266_v14  ;;  %v3458_v11 = vld [vmem:[#allocation10 + $0x270] sm:$0xf]  ;;  %v3210_v15 = vld [vmem:[#allocation10 + $0x80] sm:$0xf] }
  0xa2   : > { %1361 = vmatpush.bf16.msrb.mxu0 %v2787_v25  ;;  %1387 = vmatpush.bf16.msrb.mxu2 %v2791_v27  ;;  %v3258_v25 = vld [vmem:[#allocation10 + $0xe0] sm:$0xf]  ;;  %v3331_v27 = vor.u32 %v3837_v21, %v3330_v20  ;;  %v3849_v20 = vld [vmem:[#allocation10 + $0x1d4] sm:$0xf0]  ;;  %v3147_v21 = vor.u32 %v3791_v10, %v3146_v8 }
  0xa3   : > { %v3418_v10 = vld [vmem:[#allocation10 + $0x220] sm:$0xf] }
  0xa4   : > { %1374 = vmatpush.bf16.msrb.mxu1 %v3043_v26  ;;  %1400 = vmatpush.bf16.msrb.mxu3 %v3047_v31  ;;  %v3819_v26 = vld [vmem:[#allocation10 + $0xe4] sm:$0xf0]  ;;  %v3186_v31 = vld [vmem:[#allocation10 + $0x50] sm:$0xf] }
  0xa5   : > { %v3259_v33 = vor.u32 %v3819_v26, %v3258_v25  ;;  %v3459_v25 = vor.u32 %v3869_v12, %v3458_v11  ;;  %v3450_v26 = vld [vmem:[#allocation10 + $0x260] sm:$0xf]  ;;  %v3859_v11 = vld [vmem:[#allocation10 + $0x224] sm:$0xf0] }
  0xa6   : > { %1362 = vmatpush.bf16.msrb.mxu0 %v2755_v37  ;;  %1388 = vmatpush.bf16.msrb.mxu2 %v2759_v39  ;;  %v3187_v37 = vor.u32 %v3801_v32, %v3186_v31  ;;  %v3799_v39 = vld [vmem:[#allocation10 + $0x44] sm:$0xf0]  ;;  %v3514_v32 = vld [vmem:[#allocation10 + $0x2e0] sm:$0xf] }
  0xa7   : > { %v3515_v42 = vor.u32 %v3883_v34, %v3514_v32  ;;  %v3839_v32 = vld [vmem:[#allocation10 + $0x184] sm:$0xf0] }
  0xa8   : > { %1375 = vmatpush.bf16.msrb.mxu1 %v3011_v38  ;;  %1401 = vmatpush.bf16.msrb.mxu3 %v3015_v43  ;;  %v3178_v38 = vld [vmem:[#allocation10 + $0x40] sm:$0xf] }
  0xa9   : > { %v3179_v43 = vor.u32 %v3799_v39, %v3178_v38  ;;  %v3451_v39 = vor.u32 %v3867_v30, %v3450_v26  ;;  %v3857_v26 = vld [vmem:[#allocation10 + $0x214] sm:$0xf0] }
  0xaa   : > { %1363 = vmatpush.bf16.msrb.mxu0 %v2723_v49  ;;  %1389 = vmatpush.bf16.msrb.mxu2 %v2727_v51  ;;  %v3162_v51 = vld [vmem:[#allocation10 + $0x20] sm:$0xf]  ;;  %v3873_v30 = vld [vmem:[#allocation10 + $0x294] sm:$0xf0] }
  0xab   : > { %v3163_v56 = vor.u32 %v3795_v52, %v3162_v51  ;;  %v3845_v51 = vld [vmem:[#allocation10 + $0x1b4] sm:$0xf0] }
  0xac   : > { %1376 = vmatpush.bf16.msrb.mxu1 %v2979_v50  ;;  %1402 = vmatpush.bf16.msrb.mxu3 %v2983_v55  ;;  %v3811_v55 = vld [vmem:[#allocation10 + $0xa4] sm:$0xf0] }
  0xad   : > { %v3227_v60 = vor.u32 %v3811_v55, %v3226_v54  ;;  %v3435_v54 = vor.u32 %v3863_v47, %v3434_v46  ;;  %v3282_v55 = vld [vmem:[#allocation10 + $0x110] sm:$0xf]  ;;  %v3204_v46 = vld [vmem:[#allocation10 + $0x78] sm:$0xf0] }
  0xae   : > { %1364 = vmatpush.bf16.msrb.mxu0 %v2691_v61  ;;  %1390 = vmatpush.bf16.msrb.mxu2 %v2695_v0  ;;  %v3218_v61 = vld [vmem:[#allocation10 + $0x90] sm:$0xf]  ;;  %v3315_v0 = vor.u32 %v3833_v62, %v3314_v58  ;;  %v3861_v58 = vld [vmem:[#allocation10 + $0x234] sm:$0xf0] }
  0xaf   : > { %v3877_v62 = vld [vmem:[#allocation10 + $0x2b4] sm:$0xf0] }
  0xb0   : > { %1377 = vmatpush.bf16.msrb.mxu1 %v2947_v63  ;;  %1403 = vmatpush.bf16.msrb.mxu3 %v2951_v4  ;;  %v3809_v63 = vld [vmem:[#allocation10 + $0x94] sm:$0xf0]  ;;  %v3306_v4 = vld [vmem:[#allocation10 + $0x140] sm:$0xf] }
  0xb1   : > { %v3307_v14 = vor.u32 %v3831_v9, %v3306_v4  ;;  %v3274_v4 = vld [vmem:[#allocation10 + $0x100] sm:$0xf] }
  0xb2   : > { %1365 = vmatpush.bf16.msrb.mxu0 %v2659_v13  ;;  %1391 = vmatpush.bf16.msrb.mxu2 %v2663_v17  ;;  %v3219_v13 = vor.u32 %v3809_v63, %v3218_v61  ;;  %v3522_v17 = vld [vmem:[#allocation10 + $0x2f0] sm:$0xf]  ;;  %v3354_v63 = vld [vmem:[#allocation10 + $0x1a0] sm:$0xf] }
  0xb3   : > { %v3490_v61 = vld [vmem:[#allocation10 + $0x2b0] sm:$0xf] }
  0xb4   : > { %1378 = vmatpush.bf16.msrb.mxu1 %v2915_v16  ;;  %1404 = vmatpush.bf16.msrb.mxu3 %v2919_v18  ;;  %v3807_v16 = vld [vmem:[#allocation10 + $0x84] sm:$0xf0]  ;;  %v3885_v18 = vld [vmem:[#allocation10 + $0x2f4] sm:$0xf0]  ;;  %v3491_v12 = vor.u32 %v3877_v62, %v3490_v61  ;;  %v3802_v62 = vld [vmem:[#allocation10 + $0x64] sm:$0xf] }
  0xb5   : > { %1366 = vmatmul.bf16.vlgmr.msrb.gmra.mxu0 %v4456_v6  ;;  %1392 = vmatmul.bf16.vlgmr.msrb.gmra.mxu2 %v4456_v6  ;;  %v3797_v6 = vld [vmem:[#allocation10 + $0x34] sm:$0xf0]  ;;  %v3523_v31 = vor.u32 %v3885_v18, %v3522_v17 }
  0xb6   : > { %2196 = vmatpush.bf16.msra.mxu0 %v3203_v19  ;;  %2222 = vmatpush.bf16.msra.mxu2 %v3331_v27  ;;  %v3171_v50 = vor.u32 %v3797_v6, %v3170_v44  ;;  %v3378_v19 = vld [vmem:[#allocation10 + $0x1d0] sm:$0xf]  ;;  %v3211_v27 = vor.u32 %v3807_v16, %v3210_v15  ;;  %v3881_v44 = vld [vmem:[#allocation10 + $0x2d4] sm:$0xf0]  ;;  %v3875_v15 = vld [vmem:[#allocation10 + $0x2a4] sm:$0xf0] }
  0xb7   : > { %1379 = vmatmul.bf16.vlgmr.msrb.gmra.mxu1 %v4458_v7  ;;  %1405 = vmatmul.bf16.vlgmr.msrb.gmra.mxu3 %v4458_v7  ;;  %v3394_v7 = vld [vmem:[#allocation10 + $0x1f0] sm:$0xf]  ;;  %v3379_v22 = vor.u32 %v3849_v20, %v3378_v19  ;;  %v4476_v6 = vld [vmem:[#allocation9] sm:$0xff] }
  0xb8   : > { %2209 = vmatpush.bf16.msra.mxu1 %v3267_v24  ;;  %v3395_v49 = vor.u32 %v3853_v48, %v3394_v7  ;;  %v3829_v24 = vld [vmem:[#allocation10 + $0x134] sm:$0xf0]  ;;  %v3498_v48 = vld [vmem:[#allocation10 + $0x2c0] sm:$0xf]  ;;  %v3346_v16 = vld [vmem:[#allocation10 + $0x190] sm:$0xf] }
  0xb9   : > { %v3841_v17 = vld [vmem:[#allocation10 + $0x194] sm:$0xf0]  ;;  %v540_v19 = vperm.slane %v4476_v6, 1 }
  0xba   : > { %2197 = vmatpush.bf16.msra.mxu0 %v3195_v28  ;;  %2223 = vmatpush.bf16.msra.mxu2 %v3323_v36  ;;  %v3299_v28 = vor.u32 %v3829_v24, %v3298_v23  ;;  %v3290_v36 = vld [vmem:[#allocation10 + $0x120] sm:$0xf]  ;;  %v3347_v20 = vor.u32 %v3841_v17, %v3346_v16  ;;  %v3586_v23 = vld [vmem:[#allocation10 + $0x370] sm:$0xf]  ;;  %v3901_v24 = vld [vmem:[#allocation10 + $0x374] sm:$0xf0] }
  0xbb   : > { %2235 = vmatpush.bf16.msra.mxu3 %v3395_v49  ;;  %v3879_v49 = vld [vmem:[#allocation10 + $0x2c4] sm:$0xf0]  ;;  %v3913_v16 = vld [vmem:[#allocation10 + $0x3d4] sm:$0xf0] }
  0xbc   : > { %2210 = vmatpush.bf16.msra.mxu1 %v3259_v33  ;;  %v3847_v33 = vld [vmem:[#allocation10 + $0x1c4] sm:$0xf0]  ;;  %v3499_v59 = vor.u32 %v3879_v49, %v3498_v48  ;;  %v3466_v48 = vld [vmem:[#allocation10 + $0x280] sm:$0xf] }
  0xbd   : > { %v3371_v35 = vor.u32 %v3847_v33, %v3370_v29  ;;  %v3474_v29 = vld [vmem:[#allocation10 + $0x290] sm:$0xf]  ;;  %v3871_v49 = vld [vmem:[#allocation10 + $0x284] sm:$0xf0] }
  0xbe   : > { %2198 = vmatpush.bf16.msra.mxu0 %v3187_v37  ;;  %2224 = vmatpush.bf16.msra.mxu2 %v3315_v0  ;;  %v3827_v37 = vld [vmem:[#allocation10 + $0x124] sm:$0xf0]  ;;  %v3475_v47 = vor.u32 %v3873_v30, %v3474_v29  ;;  %v3798_v30 = vld [vmem:[#allocation10 + $0x44] sm:$0xf] }
  0xbf   : > { %2236 = vmatpush.bf16.msra.mxu3 %v3387_v3  ;;  %v3291_v38 = vor.u32 %v3827_v37, %v3290_v36  ;;  %v3843_v0 = vld [vmem:[#allocation10 + $0x1a4] sm:$0xf0]  ;;  %v3427_v3 = vor.u32 %v3861_v58, %v3426_v57  ;;  %v3897_v57 = vld [vmem:[#allocation10 + $0x354] sm:$0xf0] }
  0xc0   : > { %2211 = vmatpush.bf16.msra.mxu1 %v3251_v40  ;;  %v3442_v40 = vld [vmem:[#allocation10 + $0x250] sm:$0xf]  ;;  %v3355_v1 = vor.u32 %v3843_v0, %v3354_v63  ;;  %v3855_v36 = vld [vmem:[#allocation10 + $0x204] sm:$0xf0]  ;;  %v3467_v63 = vor.u32 %v3871_v49, %v3466_v48  ;;  %v3642_v0 = vld [vmem:[#allocation10 + $0x3e0] sm:$0xf] }
  0xc2   : > { %2199 = vmatpush.bf16.msra.mxu0 %v3179_v43  ;;  %2225 = vmatpush.bf16.msra.mxu2 %v3307_v14  ;;  %v3506_v43 = vld [vmem:[#allocation10 + $0x2d0] sm:$0xf]  ;;  %v3482_v14 = vld [vmem:[#allocation10 + $0x2a0] sm:$0xf] }
  0xc3   : > { %2237 = vmatpush.bf16.msra.mxu3 %v3379_v22  ;;  %v3507_v7 = vor.u32 %v3881_v44, %v3506_v43  ;;  %v3410_v22 = vld [vmem:[#allocation10 + $0x210] sm:$0xf]  ;;  %v3578_v43 = vld [vmem:[#allocation10 + $0x360] sm:$0xf]  ;;  %v3899_v44 = vld [vmem:[#allocation10 + $0x364] sm:$0xf0] }
  0xc4   : > { %2212 = vmatpush.bf16.msra.mxu1 %v3243_v45  ;;  %v3443_v45 = vor.u32 %v3865_v41, %v3442_v40  ;;  %v3411_v41 = vor.u32 %v3857_v26, %v3410_v22 }
  0xc6   : > { %2200 = vmatpush.bf16.msra.mxu0 %v3171_v50  ;;  %2226 = vmatpush.bf16.msra.mxu2 %v3299_v28  ;;  %v3362_v50 = vld [vmem:[#allocation10 + $0x1b0] sm:$0xf]  ;;  %v3587_v28 = vor.u32 %v3901_v24, %v3586_v23  ;;  %v3816_v24 = vld [vmem:[#allocation10 + $0xd4] sm:$0xf] }
  0xc7   : > { %2238 = vmatpush.bf16.msra.mxu3 %v3371_v35  ;;  %v3363_v52 = vor.u32 %v3845_v51, %v3362_v50  ;;  %v3402_v35 = vld [vmem:[#allocation10 + $0x200] sm:$0xf]  ;;  %v3650_v51 = vld [vmem:[#allocation10 + $0x3f0] sm:$0xf] }
  0xc8   : > { %2213 = vmatpush.bf16.msra.mxu1 %v3235_v53  ;;  %v539_v53 = vperm.slane %v4476_v6, 0 }
  0xca   : > { %2201 = vmatpush.bf16.msra.mxu0 %v3163_v56  ;;  %2227 = vmatpush.bf16.msra.mxu2 %v3291_v38  ;;  %v3825_v56 = vld [vmem:[#allocation10 + $0x114] sm:$0xf0] }
  0xcb   : > { %2239 = vmatpush.bf16.msra.mxu3 %v3363_v52  ;;  %v3917_v52 = vld [vmem:[#allocation10 + $0x3f4] sm:$0xf0] }
  0xcc   : > { %2214 = vmatpush.bf16.msra.mxu1 %v3227_v60  ;;  %v3283_v60 = vor.u32 %v3825_v56, %v3282_v55  ;;  %v3268_v55 = vld [vmem:[#allocation10 + $0xf8] sm:$0xf0]  ;;  %v3570_v56 = vld [vmem:[#allocation10 + $0x350] sm:$0xf] }
  0xce   : > { %2202 = vmatpush.bf16.msra.mxu0 %v3155_v5  ;;  %2228 = vmatpush.bf16.msra.mxu2 %v3283_v60  ;;  %v3823_v5 = vld [vmem:[#allocation10 + $0x104] sm:$0xf0]  ;;  %v3571_v60 = vor.u32 %v3897_v57, %v3570_v56  ;;  %v3794_v57 = vld [vmem:[#allocation10 + $0x24] sm:$0xf] }
  0xcf   : > { %2240 = vmatpush.bf16.msra.mxu3 %v3355_v1  ;;  %v3915_v1 = vld [vmem:[#allocation10 + $0x3e4] sm:$0xf0] }
  0xd0   : > { %2215 = vmatpush.bf16.msra.mxu1 %v3219_v13  ;;  %v3275_v13 = vor.u32 %v3823_v5, %v3274_v4  ;;  %v3643_v5 = vor.u32 %v3915_v1, %v3642_v0  ;;  %v3810_v1 = vld [vmem:[#allocation10 + $0xa4] sm:$0xf] }
  0xd2   : > { %2203 = vmatpush.bf16.msra.mxu0 %v3147_v21  ;;  %2229 = vmatpush.bf16.msra.mxu2 %v3275_v13  ;;  %v3419_v21 = vor.u32 %v3859_v11, %v3418_v10  ;;  %v3818_v11 = vld [vmem:[#allocation10 + $0xe4] sm:$0xf] }
  0xd3   : > { %2241 = vmatpush.bf16.msra.mxu3 %v3347_v20  ;;  %v3800_v20 = vld [vmem:[#allocation10 + $0x54] sm:$0xf] }
  0xd4   : > { %2216 = vmatpush.bf16.msra.mxu1 %v3211_v27  ;;  %v3483_v27 = vor.u32 %v3875_v15, %v3482_v14  ;;  %v3634_v14 = vld [vmem:[#allocation10 + $0x3d0] sm:$0xf] }
  0xd5   : > { %v3635_v23 = vor.u32 %v3913_v16, %v3634_v14 }
  0xd6   : > { %2248 = vmatpush.bf16.msrb.mxu0 %v3459_v25  ;;  %v1211_v2 = vpop.f32.mrf.mxu0  ;;  %2274 = vmatpush.bf16.msrb.mxu2 %v3587_v28  ;;  %v3911_v28 = vld [vmem:[#allocation10 + $0x3c4] sm:$0xf0] }
  0xd7   : > { %v1212_v8 = vadd.f32 %v1211_v2, %v539_v53  ;;  %v3820_v53 = vld [vmem:[#allocation10 + $0xf4] sm:$0xf] }
  0xd8   : > { %2261 = vmatpush.bf16.msrb.mxu1 %v3523_v31  ;;  %v1224_v9 = vpop.f32.mrf.mxu1  ;;  %v3338_v31 = vld [vmem:[#allocation10 + $0x180] sm:$0xf]  ;;  %v3271_v4 = vor.u32 %v3820_v53, %v3268_v55  ;;  %v3889_v53 = vld [vmem:[#allocation10 + $0x314] sm:$0xf0]  ;;  %v542_v55 = vperm.slane %v4476_v6, 3 }
  0xd9   : > { %v1225_v18 = vadd.f32 %v1224_v9, %v1212_v8  ;;  %v3339_v37 = vor.u32 %v3839_v32, %v3338_v31  ;;  %v3562_v8 = vld [vmem:[#allocation10 + $0x340] sm:$0xf]  ;;  %v3895_v9 = vld [vmem:[#allocation10 + $0x344] sm:$0xf0]  ;;  %v3180_v31 = vld [vmem:[#allocation10 + $0x48] sm:$0xf0] }
  0xda   : > { %2249 = vmatpush.bf16.msrb.mxu0 %v3451_v39  ;;  %v3563_v13 = vor.u32 %v3895_v9, %v3562_v8 }
  0xdb   : > { %v1410_v25 = vmax.f32 %v1225_v18, 0.0  ;;  %2242 = vmatpush.bf16.msra.mxu3 %v3339_v37  ;;  %v3554_v18 = vld [vmem:[#allocation10 + $0x330] sm:$0xf]  ;;  %v3244_v37 = vld [vmem:[#allocation10 + $0xc8] sm:$0xf0] }
  0xdc   : > { %2262 = vmatpush.bf16.msrb.mxu1 %v3515_v42  ;;  %v1237_v34 = vpop.f32.mrf.mxu2  ;;  %v3804_v42 = vld [vmem:[#allocation10 + $0x74] sm:$0xf] }
  0xdd   : > { %v4480_v33 = vpack.c.bf16 %v1410_v25, %v1410_v25  ;;  %v1238_v38 = vadd.f32 %v1237_v34, %v540_v19  ;;  %v3207_v61 = vor.u32 %v3804_v42, %v3204_v46  ;;  %v3893_v19 = vld [vmem:[#allocation10 + $0x334] sm:$0xf0]  ;;  %v3252_v25 = vld [vmem:[#allocation10 + $0xd8] sm:$0xf0]  ;;  %v3618_v46 = vld [vmem:[#allocation10 + $0x3b0] sm:$0xf] }
  0xde   : > { %2250 = vmatpush.bf16.msrb.mxu0 %v3443_v45  ;;  %v1213_v39 = vpop.f32.mrf.mxu0  ;;  %v1250_v40 = vpop.f32.mrf.mxu3  ;;  %v3555_v26 = vor.u32 %v3893_v19, %v3554_v18  ;;  %v3255_v32 = vor.u32 %v3816_v24, %v3252_v25  ;;  %v3156_v18 = vld [vmem:[#allocation10 + $0x18] sm:$0xf0]  ;;  %v3808_v24 = vld [vmem:[#allocation10 + $0x94] sm:$0xf] }
  0xdf   : > { %2204 = vmatmul.bf16.vlgmr.msra.gmra.mxu0 %v4480_v33  ;;  %v1251_v50 = vadd.f32 %v1250_v40, %v1238_v38  ;;  %v3546_v38 = vld [vmem:[#allocation10 + $0x320] sm:$0xf]  ;;  %v3891_v39 = vld [vmem:[#allocation10 + $0x324] sm:$0xf0]  ;;  %v3183_v40 = vor.u32 %v3798_v30, %v3180_v31  ;;  %v3220_v25 = vld [vmem:[#allocation10 + $0x98] sm:$0xf0] }
  0xe0   : > { %2263 = vmatpush.bf16.msrb.mxu1 %v3507_v7  ;;  %v1226_v45 = vpop.f32.mrf.mxu1  ;;  %v3579_v7 = vor.u32 %v3899_v44, %v3578_v43  ;;  %v3547_v42 = vor.u32 %v3891_v39, %v3546_v38  ;;  %v3172_v44 = vld [vmem:[#allocation10 + $0x38] sm:$0xf0]  ;;  %v3834_v30 = vld [vmem:[#allocation10 + $0x164] sm:$0xf]  ;;  %v3324_v31 = vld [vmem:[#allocation10 + $0x168] sm:$0xf0] }
  0xe1   : > { %v1411_v58 = vmax.f32 %v1251_v50, 0.0  ;;  %v3812_v50 = vld [vmem:[#allocation10 + $0xb4] sm:$0xf]  ;;  %v3903_v38 = vld [vmem:[#allocation10 + $0x384] sm:$0xf0] }
  0xe2   : > { %2251 = vmatpush.bf16.msrb.mxu0 %v3435_v54  ;;  %2275 = vmatpush.bf16.msrb.mxu2 %v3579_v7  ;;  %v3651_v54 = vor.u32 %v3917_v52, %v3650_v51  ;;  %v3236_v51 = vld [vmem:[#allocation10 + $0xb8] sm:$0xf0]  ;;  %v3538_v52 = vld [vmem:[#allocation10 + $0x310] sm:$0xf]  ;;  %v3806_v39 = vld [vmem:[#allocation10 + $0x84] sm:$0xf] }
  0xe3   : > { %v4483_v2 = vpack.c.bf16 %v1411_v58, %v1411_v58  ;;  %v3539_v58 = vor.u32 %v3889_v53, %v3538_v52  ;;  %v3850_v52 = vld [vmem:[#allocation10 + $0x1e4] sm:$0xf]  ;;  %v3388_v53 = vld [vmem:[#allocation10 + $0x1e8] sm:$0xf0] }
  0xe4   : > { %2264 = vmatpush.bf16.msrb.mxu1 %v3499_v59  ;;  %v3403_v59 = vor.u32 %v3855_v36, %v3402_v35  ;;  %2287 = vmatpush.bf16.msrb.mxu3 %v3651_v54  ;;  %v1239_v10 = vpop.f32.mrf.mxu2  ;;  %v541_v35 = vperm.slane %v4476_v6, 2  ;;  %v3814_v36 = vld [vmem:[#allocation10 + $0xc4] sm:$0xf] }
  0xe5   : > { %2217 = vmatmul.bf16.vlgmr.msra.gmra.mxu1 %v4483_v2  ;;  %v3247_v45 = vor.u32 %v3814_v36, %v3244_v37  ;;  %v3327_v36 = vor.u32 %v3834_v30, %v3324_v31  ;;  %v3594_v37 = vld [vmem:[#allocation10 + $0x380] sm:$0xf]  ;;  %v3866_v31 = vld [vmem:[#allocation10 + $0x264] sm:$0xf] }
  0xe6   : > { %2252 = vmatpush.bf16.msrb.mxu0 %v3427_v3  ;;  %v3196_v3 = vld [vmem:[#allocation10 + $0x68] sm:$0xf0]  ;;  %2276 = vmatpush.bf16.msrb.mxu2 %v3571_v60  ;;  %v1252_v15 = vpop.f32.mrf.mxu3  ;;  %v3239_v60 = vor.u32 %v3812_v50, %v3236_v51 }
  0xe7   : > { %v3199_v17 = vor.u32 %v3802_v62, %v3196_v3  ;;  %v3907_v62 = vld [vmem:[#allocation10 + $0x3a4] sm:$0xf0]  ;;  %v3228_v3 = vld [vmem:[#allocation10 + $0xa8] sm:$0xf0] }
  0xe8   : > { %2265 = vmatpush.bf16.msrb.mxu1 %v3491_v12  ;;  %v3260_v12 = vld [vmem:[#allocation10 + $0xe8] sm:$0xf0]  ;;  %2288 = vmatpush.bf16.msrb.mxu3 %v3643_v5  ;;  %v3887_v5 = vld [vmem:[#allocation10 + $0x304] sm:$0xf0]  ;;  %v3231_v19 = vor.u32 %v3810_v1, %v3228_v3 }
  0xe9   : > { %v3263_v22 = vor.u32 %v3818_v11, %v3260_v12  ;;  %v3836_v12 = vld [vmem:[#allocation10 + $0x174] sm:$0xf]  ;;  %v3372_v1 = vld [vmem:[#allocation10 + $0x1c8] sm:$0xf0] }
  0xea   : > { %2253 = vmatpush.bf16.msrb.mxu0 %v3419_v21  ;;  %v3188_v21 = vld [vmem:[#allocation10 + $0x58] sm:$0xf0]  ;;  %2277 = vmatpush.bf16.msrb.mxu2 %v3563_v13 }
  0xeb   : > { %v3191_v29 = vor.u32 %v3800_v20, %v3188_v21  ;;  %v3332_v13 = vld [vmem:[#allocation10 + $0x178] sm:$0xf0]  ;;  %v3602_v21 = vld [vmem:[#allocation10 + $0x390] sm:$0xf] }
  0xec   : > { %2266 = vmatpush.bf16.msrb.mxu1 %v3483_v27  ;;  %v3626_v27 = vld [vmem:[#allocation10 + $0x3c0] sm:$0xf]  ;;  %2289 = vmatpush.bf16.msrb.mxu3 %v3635_v23  ;;  %v3335_v20 = vor.u32 %v3836_v12, %v3332_v13  ;;  %v3905_v23 = vld [vmem:[#allocation10 + $0x394] sm:$0xf0]  ;;  %v3364_v12 = vld [vmem:[#allocation10 + $0x1b8] sm:$0xf0] }
  0xed   : > { %v3627_v34 = vor.u32 %v3911_v28, %v3626_v27  ;;  %v3603_v27 = vor.u32 %v3905_v23, %v3602_v21  ;;  %v3842_v23 = vld [vmem:[#allocation10 + $0x1a4] sm:$0xf] }
  0xee   : > { %2254 = vmatpush.bf16.msrb.mxu0 %v3411_v41  ;;  %2278 = vmatpush.bf16.msrb.mxu2 %v3555_v26  ;;  %v3796_v41 = vld [vmem:[#allocation10 + $0x34] sm:$0xf] }
  0xef   : > { %v3175_v56 = vor.u32 %v3796_v41, %v3172_v44  ;;  %v3396_v44 = vld [vmem:[#allocation10 + $0x1f8] sm:$0xf0] }
  0xf0   : > { %2267 = vmatpush.bf16.msrb.mxu1 %v3475_v47  ;;  %2290 = vmatpush.bf16.msrb.mxu3 %v3627_v34  ;;  %v3909_v47 = vld [vmem:[#allocation10 + $0x3b4] sm:$0xf0]  ;;  %v3148_v34 = vld [vmem:[#allocation10 + $0x8] sm:$0xf0] }
  0xf1   : > { %v3619_v49 = vor.u32 %v3909_v47, %v3618_v46 }
  0xf2   : > { %2255 = vmatpush.bf16.msrb.mxu0 %v3403_v59  ;;  %v1263_v43 = vpop.f32.mrf.mxu0  ;;  %2279 = vmatpush.bf16.msrb.mxu2 %v3547_v42  ;;  %v3164_v59 = vld [vmem:[#allocation10 + $0x28] sm:$0xf0]  ;;  %v3595_v42 = vor.u32 %v3903_v38, %v3594_v37  ;;  %v3840_v37 = vld [vmem:[#allocation10 + $0x194] sm:$0xf]  ;;  %v3348_v38 = vld [vmem:[#allocation10 + $0x198] sm:$0xf0] }
  0xf3   : > { %v1264_v7 = vadd.f32 %v1263_v43, %v541_v35  ;;  %v3167_v10 = vor.u32 %v3794_v57, %v3164_v59  ;;  %v3223_v35 = vor.u32 %v3808_v24, %v3220_v25  ;;  %v3852_v43 = vld [vmem:[#allocation10 + $0x1f4] sm:$0xf]  ;;  %v3380_v59 = vld [vmem:[#allocation10 + $0x1d8] sm:$0xf0]  ;;  %v3356_v24 = vld [vmem:[#allocation10 + $0x1a8] sm:$0xf0] }
  0xf4   : > { %2268 = vmatpush.bf16.msrb.mxu1 %v3467_v63  ;;  %v1276_v48 = vpop.f32.mrf.mxu1  ;;  %2291 = vmatpush.bf16.msrb.mxu3 %v3619_v49  ;;  %v3399_v47 = vor.u32 %v3852_v43, %v3396_v44  ;;  %v544_v25 = vperm.slane %v4476_v6, 5  ;;  %v3351_v43 = vor.u32 %v3840_v37, %v3348_v38 }
  0xf5   : > { %v1277_v54 = vadd.f32 %v1276_v48, %v1264_v7  ;;  %v3832_v7 = vld [vmem:[#allocation10 + $0x154] sm:$0xf]  ;;  %v3316_v48 = vld [vmem:[#allocation10 + $0x158] sm:$0xf0] }
  0xf6   : > { %2300 = vmatpush.bf16.msra.mxu0 %v3207_v61  ;;  %v3610_v61 = vld [vmem:[#allocation10 + $0x3a0] sm:$0xf]  ;;  %2280 = vmatpush.bf16.msrb.mxu2 %v3539_v58  ;;  %v3319_v51 = vor.u32 %v3832_v7, %v3316_v48  ;;  %v3848_v58 = vld [vmem:[#allocation10 + $0x1d4] sm:$0xf]  ;;  %v3524_v7 = vld [vmem:[#allocation10 + $0x2f8] sm:$0xf0] }
  0xf7   : > { %v1412_v63 = vmax.f32 %v1277_v54, 0.0  ;;  %v3611_v0 = vor.u32 %v3907_v62, %v3610_v61  ;;  %v3391_v54 = vor.u32 %v3850_v52, %v3388_v53  ;;  %v3828_v61 = vld [vmem:[#allocation10 + $0x134] sm:$0xf]  ;;  %v3300_v62 = vld [vmem:[#allocation10 + $0x138] sm:$0xf0] }
  0xf8   : > { %2313 = vmatpush.bf16.msra.mxu1 %v3271_v4  ;;  %v3530_v4 = vld [vmem:[#allocation10 + $0x300] sm:$0xf]  ;;  %v1289_v9 = vpop.f32.mrf.mxu2  ;;  %v3864_v48 = vld [vmem:[#allocation10 + $0x254] sm:$0xf] }
  0xf9   : > { %v4488_v8 = vpack.c.bf16 %v1412_v63, %v1412_v63  ;;  %v3531_v11 = vor.u32 %v3887_v5, %v3530_v4  ;;  %v1290_v14 = vadd.f32 %v1289_v9, %v542_v55  ;;  %2292 = vmatpush.bf16.msrb.mxu3 %v3611_v0  ;;  %v3830_v55 = vld [vmem:[#allocation10 + $0x144] sm:$0xf]  ;;  %v3303_v63 = vor.u32 %v3828_v61, %v3300_v62  ;;  %v3292_v9 = vld [vmem:[#allocation10 + $0x128] sm:$0xf0] }
  0xfa   : > { %2301 = vmatpush.bf16.msra.mxu0 %v3199_v17  ;;  %v1302_v15 = vpop.f32.mrf.mxu3  ;;  %v1265_v16 = vpop.f32.mrf.mxu0  ;;  %v3792_v17 = vld [vmem:[#allocation10 + $0x14] sm:$0xf]  ;;  %v3846_v0 = vld [vmem:[#allocation10 + $0x1c4] sm:$0xf]  ;;  %v543_v4 = vperm.slane %v4476_v6, 4 }
  0xfb   : > { %2230 = vmatmul.bf16.vlgmr.msra.gmra.mxu2 %v4488_v8  ;;  %v1303_v26 = vadd.f32 %v1302_v15, %v1290_v14  ;;  %v3159_v28 = vor.u32 %v3792_v17, %v3156_v18  ;;  %v3375_v3 = vor.u32 %v3846_v0, %v3372_v1  ;;  %v3826_v5 = vld [vmem:[#allocation10 + $0x124] sm:$0xf]  ;;  %v3824_v17 = vld [vmem:[#allocation10 + $0x114] sm:$0xf]  ;;  %v3284_v18 = vld [vmem:[#allocation10 + $0x118] sm:$0xf0] }
  0xfc   : > { %2314 = vmatpush.bf16.msra.mxu1 %v3263_v22  ;;  %v1278_v22 = vpop.f32.mrf.mxu1  ;;  %2281 = vmatpush.bf16.msrb.mxu2 %v3531_v11  ;;  %v3844_v11 = vld [vmem:[#allocation10 + $0x1b4] sm:$0xf]  ;;  %v3436_v61 = vld [vmem:[#allocation10 + $0x248] sm:$0xf0] }
  0xfd   : > { %2293 = vmatpush.bf16.msrb.mxu3 %v3603_v27  ;;  %v3367_v14 = vor.u32 %v3844_v11, %v3364_v12  ;;  %v3460_v22 = vld [vmem:[#allocation10 + $0x278] sm:$0xf0]  ;;  %v3880_v1 = vld [vmem:[#allocation10 + $0x2d4] sm:$0xf]  ;;  %v3878_v11 = vld [vmem:[#allocation10 + $0x2c4] sm:$0xf] }
  0xfe   : > { %2302 = vmatpush.bf16.msra.mxu0 %v3191_v29  ;;  %v3790_v29 = vld [vmem:[#allocation10 + $0x4] sm:$0xf]  ;;  %v3500_v12 = vld [vmem:[#allocation10 + $0x2c8] sm:$0xf0] }
  0xff   : > { %v3151_v46 = vor.u32 %v3790_v29, %v3148_v34  ;;  %v3276_v29 = vld [vmem:[#allocation10 + $0x108] sm:$0xf0] }
 0x100   : > { %2315 = vmatpush.bf16.msra.mxu1 %v3255_v32  ;;  %2326 = vmatpush.bf16.msra.mxu2 %v3335_v20  ;;  %v1413_v32 = vmax.f32 %v1303_v26, 0.0  ;;  %v3287_v20 = vor.u32 %v3824_v17, %v3284_v18  ;;  %v3359_v26 = vor.u32 %v3842_v23, %v3356_v24  ;;  %v3876_v18 = vld [vmem:[#allocation10 + $0x2b4] sm:$0xf] }
 0x101   : > { %2294 = vmatpush.bf16.msrb.mxu3 %v3595_v42 }
 0x102   : > { %2303 = vmatpush.bf16.msra.mxu0 %v3183_v40  ;;  %v3212_v40 = vld [vmem:[#allocation10 + $0x88] sm:$0xf0]  ;;  %v4491_v41 = vpack.c.bf16 %v1413_v32, %v1413_v32  ;;  %v1304_v49 = vpop.f32.mrf.mxu3 }
 0x103   : > { %v3215_v50 = vor.u32 %v3806_v39, %v3212_v40  ;;  %v3444_v49 = vld [vmem:[#allocation10 + $0x258] sm:$0xf0] }
 0x104   : > { %2316 = vmatpush.bf16.msra.mxu1 %v3247_v45  ;;  %v1291_v45 = vpop.f32.mrf.mxu2  ;;  %2327 = vmatpush.bf16.msra.mxu2 %v3327_v36  ;;  %v3452_v36 = vld [vmem:[#allocation10 + $0x268] sm:$0xf0] }
 0x105   : > { %2243 = vmatmul.bf16.vlgmr.msra.gmra.mxu3 %v4491_v41 }
 0x106   : > { %2304 = vmatpush.bf16.msra.mxu0 %v3175_v56  ;;  %2339 = vmatpush.bf16.msra.mxu3 %v3399_v47  ;;  %v3308_v56 = vld [vmem:[#allocation10 + $0x148] sm:$0xf0]  ;;  %v3884_v47 = vld [vmem:[#allocation10 + $0x2f4] sm:$0xf] }
 0x107   : > { %v3311_v57 = vor.u32 %v3830_v55, %v3308_v56  ;;  %v3447_v56 = vor.u32 %v3864_v48, %v3444_v49 }
 0x108   : > { %2317 = vmatpush.bf16.msra.mxu1 %v3239_v60  ;;  %2328 = vmatpush.bf16.msra.mxu2 %v3319_v51  ;;  %v3383_v60 = vor.u32 %v3848_v58, %v3380_v59  ;;  %v3340_v51 = vld [vmem:[#allocation10 + $0x188] sm:$0xf0] }
 0x109   : > { %v3516_v58 = vld [vmem:[#allocation10 + $0x2e8] sm:$0xf0] }
 0x10a   : > { %2305 = vmatpush.bf16.msra.mxu0 %v3167_v10  ;;  %2340 = vmatpush.bf16.msra.mxu3 %v3391_v54  ;;  %v3295_v10 = vor.u32 %v3826_v5, %v3292_v9  ;;  %v3527_v54 = vor.u32 %v3884_v47, %v3524_v7  ;;  %v3428_v5 = vld [vmem:[#allocation10 + $0x238] sm:$0xf0] }
 0x10c   : > { %2318 = vmatpush.bf16.msra.mxu1 %v3231_v19  ;;  %2329 = vmatpush.bf16.msra.mxu2 %v3311_v57  ;;  %v3868_v19 = vld [vmem:[#allocation10 + $0x274] sm:$0xf]  ;;  %v3882_v57 = vld [vmem:[#allocation10 + $0x2e4] sm:$0xf] }
 0x10d   : > { %v3463_v30 = vor.u32 %v3868_v19, %v3460_v22  ;;  %v3492_v19 = vld [vmem:[#allocation10 + $0x2b8] sm:$0xf0] }
 0x10e   : > { %2306 = vmatpush.bf16.msra.mxu0 %v3159_v28  ;;  %2341 = vmatpush.bf16.msra.mxu3 %v3383_v60  ;;  %v3822_v28 = vld [vmem:[#allocation10 + $0x104] sm:$0xf]  ;;  %v3495_v23 = vor.u32 %v3876_v18, %v3492_v19  ;;  %v3548_v19 = vld [vmem:[#allocation10 + $0x328] sm:$0xf0] }
 0x10f   : > { %v3279_v32 = vor.u32 %v3822_v28, %v3276_v29  ;;  %v3862_v60 = vld [vmem:[#allocation10 + $0x244] sm:$0xf]  ;;  %v3484_v28 = vld [vmem:[#allocation10 + $0x2a8] sm:$0xf0] }
 0x110   : > { %2319 = vmatpush.bf16.msra.mxu1 %v3223_v35  ;;  %2330 = vmatpush.bf16.msra.mxu2 %v3303_v63  ;;  %v3519_v63 = vor.u32 %v3882_v57, %v3516_v58  ;;  %v3439_v0 = vor.u32 %v3862_v60, %v3436_v61  ;;  %v3854_v29 = vld [vmem:[#allocation10 + $0x204] sm:$0xf]  ;;  %v3572_v57 = vld [vmem:[#allocation10 + $0x358] sm:$0xf0] }
 0x111   : > { %v3890_v18 = vld [vmem:[#allocation10 + $0x324] sm:$0xf] }
 0x112   : > { %2307 = vmatpush.bf16.msra.mxu0 %v3151_v46  ;;  %v1315_v13 = vpop.f32.mrf.mxu0  ;;  %2342 = vmatpush.bf16.msra.mxu3 %v3375_v3  ;;  %v3455_v46 = vor.u32 %v3866_v31, %v3452_v36  ;;  %v3508_v3 = vld [vmem:[#allocation10 + $0x2d8] sm:$0xf0]  ;;  %v3900_v31 = vld [vmem:[#allocation10 + $0x374] sm:$0xf] }
 0x113   : > { %v1316_v15 = vadd.f32 %v1315_v13, %v543_v4  ;;  %v3860_v4 = vld [vmem:[#allocation10 + $0x234] sm:$0xf]  ;;  %v3511_v9 = vor.u32 %v3880_v1, %v3508_v3  ;;  %v3858_v13 = vld [vmem:[#allocation10 + $0x224] sm:$0xf] }
 0x114   : > { %2320 = vmatpush.bf16.msra.mxu1 %v3215_v50  ;;  %v1328_v16 = vpop.f32.mrf.mxu1  ;;  %2331 = vmatpush.bf16.msra.mxu2 %v3295_v10  ;;  %v3838_v50 = vld [vmem:[#allocation10 + $0x184] sm:$0xf]  ;;  %v3431_v10 = vor.u32 %v3860_v4, %v3428_v5  ;;  %v3564_v4 = vld [vmem:[#allocation10 + $0x348] sm:$0xf0] }
 0x115   : > { %v1329_v21 = vadd.f32 %v1328_v16, %v1316_v15  ;;  %v3343_v53 = vor.u32 %v3838_v50, %v3340_v51  ;;  %v3503_v15 = vor.u32 %v3878_v11, %v3500_v12  ;;  %v545_v16 = vperm.slane %v4476_v6, 6  ;;  %v3468_v50 = vld [vmem:[#allocation10 + $0x288] sm:$0xf0]  ;;  %v3894_v3 = vld [vmem:[#allocation10 + $0x344] sm:$0xf] }
 0x116   : > { %2343 = vmatpush.bf16.msra.mxu3 %v3367_v14  ;;  %v3420_v14 = vld [vmem:[#allocation10 + $0x228] sm:$0xf0]  ;;  %v3912_v11 = vld [vmem:[#allocation10 + $0x3d4] sm:$0xf]  ;;  %v3636_v12 = vld [vmem:[#allocation10 + $0x3d8] sm:$0xf0] }
 0x117   : > { %v1414_v27 = vmax.f32 %v1329_v21, 0.0  ;;  %v3423_v17 = vor.u32 %v3858_v13, %v3420_v14  ;;  %v3412_v21 = vld [vmem:[#allocation10 + $0x218] sm:$0xf0]  ;;  %v3639_v14 = vor.u32 %v3912_v11, %v3636_v12 }
 0x118   : > { %2332 = vmatpush.bf16.msra.mxu2 %v3287_v20  ;;  %v1341_v35 = vpop.f32.mrf.mxu2  ;;  %v3856_v20 = vld [vmem:[#allocation10 + $0x214] sm:$0xf]  ;;  %v3556_v13 = vld [vmem:[#allocation10 + $0x338] sm:$0xf0] }
 0x119   : > { %v4496_v34 = vpack.c.bf16 %v1414_v27, %v1414_v27  ;;  %v1342_v39 = vadd.f32 %v1341_v35, %v544_v25  ;;  %v3874_v27 = vld [vmem:[#allocation10 + $0x2a4] sm:$0xf]  ;;  %v546_v35 = vperm.slane %v4476_v6, 7 }
 0x11a   : > { %v1354_v40 = vpop.f32.mrf.mxu3  ;;  %v1317_v42 = vpop.f32.mrf.mxu0  ;;  %2344 = vmatpush.bf16.msra.mxu3 %v3359_v26  ;;  %v3415_v26 = vor.u32 %v3856_v20, %v3412_v21  ;;  %v3487_v36 = vor.u32 %v3874_v27, %v3484_v28  ;;  %v3870_v6 = vld [vmem:[#allocation10 + $0x284] sm:$0xf]  ;;  %v3551_v21 = vor.u32 %v3890_v18, %v3548_v19  ;;  %v3612_v28 = vld [vmem:[#allocation10 + $0x3a8] sm:$0xf0]  ;;  %v2417_v18 = vld [vmem:[%s4566_s4] sm:$0x3] }
 0x11b   : > { %2256 = vmatmul.bf16.vlgmr.msrb.gmra.mxu0 %v4496_v34  ;;  %v1355_v45 = vadd.f32 %v1354_v40, %v1342_v39  ;;  %v3872_v39 = vld [vmem:[#allocation10 + $0x294] sm:$0xf]  ;;  %v3476_v40 = vld [vmem:[#allocation10 + $0x298] sm:$0xf0]  ;;  %v3906_v27 = vld [vmem:[#allocation10 + $0x3a4] sm:$0xf] }
 0x11c   : > { %v1330_v44 = vpop.f32.mrf.mxu1  ;;  %2333 = vmatpush.bf16.msra.mxu2 %v3279_v32  ;;  %2352 = vmatpush.bf16.msrb.mxu0 %v3463_v30  ;;  %v3588_v32 = vld [vmem:[#allocation10 + $0x378] sm:$0xf0]  ;;  %v3479_v48 = vor.u32 %v3872_v39, %v3476_v40 }
 0x11d   : > { %v1415_v52 = vmax.f32 %v1355_v45, 0.0  ;;  %v3591_v42 = vor.u32 %v3900_v31, %v3588_v32  ;;  %v3898_v45 = vld [vmem:[#allocation10 + $0x364] sm:$0xf]  ;;  %v3904_v31 = vld [vmem:[#allocation10 + $0x394] sm:$0xf] }
 0x11e   : > { %2345 = vmatpush.bf16.msra.mxu3 %v3351_v43  ;;  %v3604_v32 = vld [vmem:[#allocation10 + $0x398] sm:$0xf0] }
 0x11f   : > { %v4499_v55 = vpack.c.bf16 %v1415_v52, %v1415_v52 }
 0x120   : > { %2353 = vmatpush.bf16.msrb.mxu0 %v3455_v46  ;;  %v1343_v59 = vpop.f32.mrf.mxu2  ;;  %v3580_v46 = vld [vmem:[#allocation10 + $0x368] sm:$0xf0] }
 0x121   : > { %2269 = vmatmul.bf16.vlgmr.msrb.gmra.mxu1 %v4499_v55  ;;  %v3583_v52 = vor.u32 %v3898_v45, %v3580_v46  ;;  %v3471_v59 = vor.u32 %v3870_v6, %v3468_v50 }
 0x122   : > { %v1356_v62 = vpop.f32.mrf.mxu3  ;;  %2346 = vmatpush.bf16.msra.mxu3 %v3343_v53  ;;  %2365 = vmatpush.bf16.msrb.mxu1 %v3527_v54  ;;  %v3916_v53 = vld [vmem:[#allocation10 + $0x3f4] sm:$0xf]  ;;  %v3652_v54 = vld [vmem:[#allocation10 + $0x3f8] sm:$0xf0] }
 0x123   : > { %v3655_v60 = vor.u32 %v3916_v53, %v3652_v54 }
 0x124   : > { %2354 = vmatpush.bf16.msrb.mxu0 %v3447_v56  ;;  %v3896_v56 = vld [vmem:[#allocation10 + $0x354] sm:$0xf] }
 0x125   : > { %v3575_v62 = vor.u32 %v3896_v56, %v3572_v57 }
 0x126   : > { %2366 = vmatpush.bf16.msrb.mxu1 %v3519_v63  ;;  %v3914_v63 = vld [vmem:[#allocation10 + $0x3e4] sm:$0xf] }
 0x128   : > { %2355 = vmatpush.bf16.msrb.mxu0 %v3439_v0  ;;  %v3644_v0 = vld [vmem:[#allocation10 + $0x3e8] sm:$0xf0] }
 0x12a   : > { %2367 = vmatpush.bf16.msrb.mxu1 %v3511_v9  ;;  %v3647_v9 = vor.u32 %v3914_v63, %v3644_v0 }
 0x12b   : > { %2308 = vmatmul.bf16.vlgmr.msra.gmra.mxu0 %v4480_v33  ;;  %v3404_v33 = vld [vmem:[#allocation10 + $0x208] sm:$0xf0] }
 0x12c   : > { %2356 = vmatpush.bf16.msrb.mxu0 %v3431_v10  ;;  %v3407_v38 = vor.u32 %v3854_v29, %v3404_v33  ;;  %v3567_v10 = vor.u32 %v3894_v3, %v3564_v4  ;;  %v3886_v29 = vld [vmem:[#allocation10 + $0x304] sm:$0xf]  ;;  %v3532_v33 = vld [vmem:[#allocation10 + $0x308] sm:$0xf0] }
 0x12e   : > { %2368 = vmatpush.bf16.msrb.mxu1 %v3503_v15 }
 0x130   : > { %2357 = vmatpush.bf16.msrb.mxu0 %v3423_v17  ;;  %v3628_v17 = vld [vmem:[#allocation10 + $0x3c8] sm:$0xf0] }
 0x131   : > { %2321 = vmatmul.bf16.vlgmr.msra.gmra.mxu1 %v4483_v2 }
 0x132   : > { %v1367_v22 = vpop.f32.mrf.mxu0  ;;  %2369 = vmatpush.bf16.msrb.mxu1 %v3495_v23  ;;  %v3620_v23 = vld [vmem:[#allocation10 + $0x3b8] sm:$0xf0] }
 0x133   : > { %v1368_v24 = vadd.f32 %v1367_v22, %v545_v16  ;;  %v3910_v16 = vld [vmem:[#allocation10 + $0x3c4] sm:$0xf]  ;;  %v3908_v22 = vld [vmem:[#allocation10 + $0x3b4] sm:$0xf] }
 0x134   : > { %v1380_v25 = vpop.f32.mrf.mxu1  ;;  %2358 = vmatpush.bf16.msrb.mxu0 %v3415_v26  ;;  %v3631_v20 = vor.u32 %v3910_v16, %v3628_v17  ;;  %v2411_v17 = vld [vmem:[%s4440_s14] sm:$0xff] }
 0x135   : > { %v1381_v30 = vadd.f32 %v1380_v25, %v1368_v24  ;;  %v3888_v24 = vld [vmem:[#allocation10 + $0x314] sm:$0xf]  ;;  %v3623_v25 = vor.u32 %v3908_v22, %v3620_v23 }
 0x136   : > { %2370 = vmatpush.bf16.msrb.mxu1 %v3487_v36  ;;  %v3902_v36 = vld [vmem:[#allocation10 + $0x384] sm:$0xf] }
 0x137   : > { %v1416_v37 = vmax.f32 %v1381_v30, 0.0  ;;  %v3615_v30 = vor.u32 %v3906_v27, %v3612_v28 }
 0x138   : > { %v1393_v44 = vpop.f32.mrf.mxu2  ;;  %2359 = vmatpush.bf16.msrb.mxu0 %v3407_v38 }
 0x139   : > { %v4506_v43 = vpack.c.bf16 %v1416_v37, %v1416_v37  ;;  %v1394_v47 = vadd.f32 %v1393_v44, %v546_v35  ;;  %v3607_v35 = vor.u32 %v3904_v31, %v3604_v32  ;;  %v3596_v37 = vld [vmem:[#allocation10 + $0x388] sm:$0xf0] }
 0x13a   : > { %v1406_v7 = vpop.f32.mrf.mxu3  ;;  %v1369_v2 = vpop.f32.mrf.mxu0  ;;  %2371 = vmatpush.bf16.msrb.mxu1 %v3479_v48  ;;  %v3599_v38 = vor.u32 %v3902_v36, %v3596_v37 }
 0x13b   : > { %2282 = vmatmul.bf16.vlgmr.msrb.gmra.mxu2 %v4506_v43  ;;  %v1407_v51 = vadd.f32 %v1406_v7, %v1394_v47  ;;  %2360 = vmatmul.bf16.vlgmr.msrb.gmra.mxu0 %v4496_v34  ;;  %v3892_v34 = vld [vmem:[#allocation10 + $0x334] sm:$0xf] }
 0x13c   : > { %v1382_v49 = vpop.f32.mrf.mxu1  ;;  %2378 = vmatpush.bf16.msrb.mxu2 %v3591_v42  ;;  %v3559_v15 = vor.u32 %v3892_v34, %v3556_v13 }
 0x13d   : > { %v1417_v58 = vmax.f32 %v1407_v51, 0.0 }
 0x13e   : > { %2372 = vmatpush.bf16.msrb.mxu1 %v3471_v59 }
 0x13f   : > { %v1427_v61 = vpack.c.bf16 %v1417_v58, %v1417_v58 }
 0x140   : > { %2379 = vmatpush.bf16.msrb.mxu2 %v3583_v52  ;;  %v1395_v1 = vpop.f32.mrf.mxu2 }
 0x141   : > { %2295 = vmatmul.bf16.vlgmr.msrb.gmra.mxu3 %v1427_v61  ;;  %2373 = vmatmul.bf16.vlgmr.msrb.gmra.mxu1 %v4499_v55  ;;  %v3540_v55 = vld [vmem:[#allocation10 + $0x318] sm:$0xf0] }
 0x142   : > { %v1408_v5 = vpop.f32.mrf.mxu3  ;;  %2391 = vmatpush.bf16.msrb.mxu3 %v3655_v60  ;;  %v3543_v26 = vor.u32 %v3888_v24, %v3540_v55  ;;  %v2419_v55 = vperm.slane %v2417_v18, 0 }
 0x144   : > { %2380 = vmatpush.bf16.msrb.mxu2 %v3575_v62 }
 0x146   : > { %2392 = vmatpush.bf16.msrb.mxu3 %v3647_v9 }
 0x148   : > { %2381 = vmatpush.bf16.msrb.mxu2 %v3567_v10 }
 0x14a   : > { %2393 = vmatpush.bf16.msrb.mxu3 %v3639_v14 }
 0x14b   : > { %2334 = vmatmul.bf16.vlgmr.msra.gmra.mxu2 %v4488_v8  ;;  %v3535_v8 = vor.u32 %v3886_v29, %v3532_v33 }
 0x14c   : > { %2382 = vmatpush.bf16.msrb.mxu2 %v3559_v15 }
 0x14e   : > { %2394 = vmatpush.bf16.msrb.mxu3 %v3631_v20 }
 0x150   : > { %2383 = vmatpush.bf16.msrb.mxu2 %v3551_v21  ;;  %v2412_v21 = vld [vmem:[%s4440_s14 + $0x8] sm:$0xff]  ;;  %s4195_s14 = sshra.s32 %s2492_s23, 4  ;;  %s4196_s14 = int_to_ptr.hbm [resolvable:$true] %s4195_s14 }
 0x151   : > { %2347 = vmatmul.bf16.vlgmr.msra.gmra.mxu3 %v4491_v41  ;;  %s4197_s1 = scalar_lea.hbm %s4196_s14, 16  ;;  %p4202_p9 = scmp.lt.s32.totalorder %s4196_s14, %s4569_s7 }
 0x152   : > { %2395 = vmatpush.bf16.msrb.mxu3 %v3623_v25  ;;  %v2420_v25 = vperm.slane %v2417_v18, 1  ;;  %p4198_p1 = scmp.ne.s32.totalorder %s4196_s14, %s4197_s1  ;;  %p4203_p10 = scmp.lt.s32.totalorder %s4201_s19, %s4197_s1 }
 0x154   : > { %2384 = vmatpush.bf16.msrb.mxu2 %v3543_v26  ;;  %p4199_p3 = pnand %p4198_p1, %p4414_p0  ;;  %p4204_p12 = por %p4203_p10, %p4202_p9 }
 0x156   : > { %2396 = vmatpush.bf16.msrb.mxu3 %v3615_v30  ;;  %v4281_v30 = vmov 256.0   ;;  %p4200_p8 = pneg %p4199_p3 }
 0x157   : > { %4027 = vrcp.f32 %v4281_v30 }
 0x158   : > { %2385 = vmatpush.bf16.msrb.mxu2 %v3535_v8  ;;  %p4205_p13 = pnand %p4204_p12, %p4200_p8 }
 0x15a   : > { %2397 = vmatpush.bf16.msrb.mxu3 %v3607_v35 }
 0x15b   : > { %2386 = vmatmul.bf16.vlgmr.msrb.gmra.mxu2 %v4506_v43 }
 0x15c   : > { %v2205_v39 = vpop.f32.mrf.mxu0 }
 0x15d   : > { %v4028_v8 = vpop.eup %4027 }
 0x15e   : > { %2398 = vmatpush.bf16.msrb.mxu3 %v3599_v38  ;;  %v2429_v31 = vmul.f32 256.0, %v4028_v8  ;;  %vm2433_vm0 = vweird.f32 %v4028_v8 }
 0x160   : > { %v2430_v32 = vsub.f32 1.0, %v2429_v31 }
 0x161   : > { %2399 = vmatmul.bf16.vlgmr.msrb.gmra.mxu3 %v1427_v61 }
 0x162   : > { %v2218_v40 = vpop.f32.mrf.mxu1  ;;  %v2431_v35 = vmul.f32 %v4028_v8, %v2430_v32 }
 0x163   : > { %v2219_v41 = vadd.f32 %v2218_v40, %v2205_v39 }
 0x164   : > { %v2207_v42 = vpop.f32.mrf.mxu0  ;;  %v2432_v36 = vadd.f32 %v4028_v8, %v2431_v35 }
 0x166   : > { %v2434_v37 = vsel %vm2433_vm0, %v4028_v8, %v2432_v36 }
 0x16a   : > { %v2220_v44 = vpop.f32.mrf.mxu1 }
 0x17e   : > { %v2231_v45 = vpop.f32.mrf.mxu2 }
 0x17f   : > { %v2232_v46 = vadd.f32 %v2231_v45, %v2219_v41 }
 0x186   : > { %v2233_v2 = vpop.f32.mrf.mxu2 }
 0x188   : > { %v2244_v47 = vpop.f32.mrf.mxu3 }
 0x189   : > { %v2245_v7 = vadd.f32 %v2244_v47, %v2232_v46 }
 0x190   : > { %v2246_v48 = vpop.f32.mrf.mxu3 }
 0x198   : > { %v2257_v49 = vpop.f32.mrf.mxu0 }
 0x199   : > { %v2258_v6 = vadd.f32 %v2257_v49, %v2245_v7 }
 0x19e   : > { %v2270_v50 = vpop.f32.mrf.mxu1 }
 0x19f   : > { %v2271_v12 = vadd.f32 %v2270_v50, %v2258_v6  ;;  %v2457_v50 = vld [vmem:[%s4567_s5] sm:$0x3] }
 0x1a0   : > { %v2259_v51 = vpop.f32.mrf.mxu0 }
 0x1a6   : > { %v2272_v52 = vpop.f32.mrf.mxu1 }
 0x1a8   : > { %v2309_v43 = vpop.f32.mrf.mxu0 }
 0x1ae   : > { %v2322_v53 = vpop.f32.mrf.mxu1 }
 0x1af   : > { %v2323_v4 = vadd.f32 %v2322_v53, %v2309_v43  ;;  %v2465_v43 = vld [vmem:[#allocation12] sm:$0x3]  ;;  %v2459_v53 = vperm.slane %v2457_v50, 0 }
 0x1b0   : > { %v2311_v54 = vpop.f32.mrf.mxu0 }
 0x1b1   : > { %v2460_v54 = vperm.slane %v2457_v50, 1 }
 0x1b6   : > { %v2324_v56 = vpop.f32.mrf.mxu1 }
 0x1b8   : > { %v2361_v57 = vpop.f32.mrf.mxu0 }
 0x1be   : > { %v2283_v58 = vpop.f32.mrf.mxu2  ;;  %v2374_v59 = vpop.f32.mrf.mxu1 }
 0x1bf   : > { %v2284_v14 = vadd.f32 %v2283_v58, %v2271_v12 }
 0x1c0   : > { %v2363_v60 = vpop.f32.mrf.mxu0 }
 0x1c1   : > { %v2468_v60 = vperm.slane %v2465_v43, 1 }
 0x1c4   : > { %v2296_v61 = vpop.f32.mrf.mxu3 }
 0x1c5   : > { %v2297_v15 = vadd.f32 %v2296_v61, %v2284_v14 }
 0x1c6   : > { %v2285_v62 = vpop.f32.mrf.mxu2  ;;  %v2376_v63 = vpop.f32.mrf.mxu1 }
 0x1c7   : > { %v2415_v22 = vadd.f32 %v2411_v17, %v2297_v15 }
 0x1c9   : > { %v2423_v27 = vadd.f32 %v2419_v55, %v2415_v22 }
 0x1cc   : > { %v2298_v0 = vpop.f32.mrf.mxu3 }
 0x1ce   : > { %v2335_v1 = vpop.f32.mrf.mxu2 }
 0x1cf   : > { %v2336_v9 = vadd.f32 %v2335_v1, %v2323_v4 }
 0x1d4   : > { %v2348_v3 = vpop.f32.mrf.mxu3 }
 0x1d5   : > { %v2349_v10 = vadd.f32 %v2348_v3, %v2336_v9 }
 0x1d6   : > { %v2337_v5 = vpop.f32.mrf.mxu2 }
 0x1d7   : > { %v2362_v34 = vadd.f32 %v2361_v57, %v2349_v10 }
 0x1d9   : > { %v2375_v16 = vadd.f32 %v2374_v59, %v2362_v34  ;;  %v2467_v59 = vperm.slane %v2465_v43, 0 }
 0x1dc   : > { %v2350_v11 = vpop.f32.mrf.mxu3 }
 0x1de   : > { %v2387_v13 = vpop.f32.mrf.mxu2 }
 0x1df   : > { %v2388_v19 = vadd.f32 %v2387_v13, %v2375_v16 }
 0x1e4   : > { %v2400_v20 = vpop.f32.mrf.mxu3 }
 0x1e5   : > { %v2401_v23 = vadd.f32 %v2400_v20, %v2388_v19 }
 0x1e6   : > { %v2389_v24 = vpop.f32.mrf.mxu2 }
 0x1e7   : > { %v2416_v26 = vadd.f32 %v2412_v21, %v2401_v23 }
 0x1e9   : > { %v2424_v28 = vadd.f32 %v2420_v25, %v2416_v26 }
 0x1eb   : > { %v2425_v29 = vadd.f32 %v2424_v28, %v2423_v27 }
 0x1ec   : > { %v2402_v33 = vpop.f32.mrf.mxu3 }
 0x1ed   : > { %2426 = vadd.xlane.f32.xlu0 %v2425_v29 }
 0x260   : > { %v2427_v38 = vpop.xlane.xlu0 %2426 }
 0x261   : > { %v2435_v39 = vmul.f32 %v2434_v37, %v2427_v38 }
 0x263   : > { %v2436_v40 = vsub.f32 %v2423_v27, %v2435_v39  ;;  %v2437_v41 = vsub.f32 %v2424_v28, %v2435_v39 }
 0x265   : > { %v2438_v42 = vmul.f32 %v2436_v40, %v2436_v40  ;;  %v2439_v44 = vmul.f32 %v2437_v41, %v2437_v41 }
 0x267   : > { %v2440_v45 = vadd.f32 %v2439_v44, %v2438_v42 }
 0x269   : > { %2441 = vadd.xlane.f32.xlu0 %v2440_v45 }
 0x2dc   : > { %v2442_v46 = vpop.xlane.xlu0 %2441 }
 0x2dd   : > { %v2443_v47 = vmul.f32 %v2442_v46, %v2434_v37 }
 0x2df   : > { %v2444_v7 = vadd.f32 1e-05, %v2443_v47 }
 0x2e1   : > { %4029 = vrsqrt.f32 %v2444_v7  ;;  %vm2451_vm2 = vweird.f32 %v2444_v7 }
 0x2e7   : > { %v4030_v2 = vpop.eup %4029 }
 0x2e8   : > { %v2446_v48 = vmul.f32 %v4030_v2, %v2444_v7  ;;  %vm2452_vm1 = vweird.f32 %v4030_v2 }
 0x2e9   : > { %vm2453_vm3 = vmor %vm2451_vm2, %vm2452_vm1 }
 0x2ea   : > { %v2447_v49 = vmul.f32 %v4030_v2, %v2446_v48 }
 0x2ec   : > { %v2448_v6 = vmul.f32 0.5, %v2447_v49 }
 0x2ee   : > { %v2449_v51 = vsub.f32 1.5, %v2448_v6 }
 0x2f0   : > { %v2450_v52 = vmul.f32 %v4030_v2, %v2449_v51 }
 0x2f2   : > { %v2454_v56 = vsel %vm2453_vm3, %v4030_v2, %v2450_v52 }
 0x2f3   : > { %v2455_v57 = vmul.f32 %v2454_v56, %v2436_v40  ;;  %v2456_v58 = vmul.f32 %v2454_v56, %v2437_v41 }
 0x2f5   : > { %v2463_v61 = vmul.f32 %v2459_v53, %v2455_v57  ;;  %v2464_v62 = vmul.f32 %v2460_v54, %v2456_v58 }
 0x2f7   : > { %v2471_v63 = vadd.f32 %v2467_v59, %v2463_v61  ;;  %v2472_v0 = vadd.f32 %v2468_v60, %v2464_v62 }
 0x2f9   : > { %2473 = vst [vmem:[%s394_s27] sm:$0xff] %v2471_v63 }
 0x2fa   : > { %2474 = vst [vmem:[%s394_s27 + $0x8] sm:$0xff] %v2472_v0 }
 0x2fb   : > { %4208 = shalt.err (!%p4205_p13)
}
 0x2fc   : > { %3937 = dma.vmem_to_hbm [thread:$0]  (%p4414_p0), %s2490_s10, 256, %s2492_s23, %s2476_s30  }
 0x2fd PF: > { %s2503_s9 = sand.u32 1, %s4251_s24   ;;  %p3957_p2 = pnand %p2621_p6, %p4421_p5 }
 0x2fe   : > { %s2504_s20 = scalar_lea.sflag [#allocation6], %s2503_s9 }
 0x2ff   : > { %p3958_p4 = pneg %p3957_p2 }
 0x301   : > { %4246 = dma.done.wait (%p3958_p4), %s2504_s20, 256  }
 0x302   : > { %4248 = vsyncadd (%p3958_p4), %s2504_s20, 4294967040  ;;  %s25_s29 = sadd.s32 1, %s4271_s29   ;;  %s4578_s24 = smov %s4255_s25 }
 0x303   : > { %p22_p7 = scmp.ge.s32.totalorder %s25_s29, 4   ;;  %s4579_s25 = smov %s4259_s26 }
 0x304   : > { %s4580_s26 = smov %s4419_s16  ;;  %s4581_s27 = smov %s4267_s28 }
 0x305   : > { %s4582_s28 = smov %s4584_s22  ;;  %24 = sbr.rel (!%p22_p7) target bundleno = 10 (0xa), region = 120 }
 0x30a   :  { %2510 = vsyncpa [#allocation5], 1 }
 0x30b   :  { %2512 = vsyncpa [#allocation5 + $0x1], 1 }
 0x30c   :  { %2513 = vsyncpa [#allocation8], 1 }
 0x30d   :  { %2514 = vsyncpa [#allocation11], 1 }
 0x30e   :  { %2515 = vsyncpa [#allocation6], 1 }
 0x30f   :  { %2517 = vsyncpa [#allocation6 + $0x1], 1 }

</bundles_post_ra>
